<compile_context>
chip_gen: v7x
topology: tpu7x:2x2x1
jax: 0.10.0
libtpu: 0.0.40
codegen_flags: <defaults>
</compile_context>

<pallas_src>
import jax
import jax.numpy as jnp
from jax import lax
from jax.experimental import pallas as pl
from jax.experimental.pallas import tpu as pltpu

_EPS = 1e-5
_VMEM_LIMIT_BYTES = 32 * 1024 * 1024  # above v5e default (16 MiB), safe on v6e/v7x


# --------------------------- in-kernel helpers ---------------------------
def _conv3x3_strip(xs, w_ref, b_ref):
    """3x3 'valid' conv over a row strip.

    xs    : (R+2, W, C) float32 activation strip incl. 1-row top/bottom halo.
    w_ref : (9*C, C) ref, tap-major rows ((ky*3+kx)*C + cin, cout), MXU dtype.
    b_ref : (1, C) float32 ref.
    Returns (R*W, C) float32 (conv + bias).
    """
    Rp2, W, C = xs.shape
    R = Rp2 - 2
    # reflect-pad the W axis by 1 (H halo already present)
    xw = jnp.concatenate([xs[:, 1:2, :], xs, xs[:, W - 2:W - 1, :]], axis=1)   # (R+2, W+2, C)
    # hoist the 3 misaligned W (sublane) shifts out of the 9-tap loop
    shifted = [xw[:, kx:kx + W, :] for kx in range(3)]                          # 3 x (R+2, W, C)
    # im2col slab -> a single MXU matmul with K = 9*C, bf16 operands, f32 acc
    parts = [shifted[kx][ky:ky + R].reshape(R * W, C)
             for ky in range(3) for kx in range(3)]
    slab = jnp.concatenate(parts, axis=-1).astype(w_ref.dtype)                  # (R*W, 9C)
    out = jnp.dot(slab, w_ref[...], preferred_element_type=jnp.float32)         # (R*W, C) f32
    return out + b_ref[...].astype(jnp.float32)


def _accumulate_stats(stats_ref, y):
    """Fused IN-stats epilogue: accumulate per-channel sum / sumsq of y (R*W, C)."""
    psum = jnp.sum(y, axis=0, keepdims=True)              # (1, C)
    psumsq = jnp.sum(y * y, axis=0, keepdims=True)        # (1, C)
    upd = jnp.concatenate([psum, psumsq], axis=0)[None]   # (1, 2, C)

    @pl.when(pl.program_id(1) == 0)                       # first strip of this image
    def _():
        stats_ref[...] = jnp.zeros_like(stats_ref)

    stats_ref[...] += upd


# ------------------------------- kernels ---------------------------------
def _pass1_kernel(xs_ref, w_ref, b_ref, hraw_ref, stats_ref):
    # xs_ref: (1, R+2, W, C) input strip with halo; hraw_ref: (1, R, W, C)
    xs = xs_ref[0].astype(jnp.float32)
    Rp2, W, C = xs.shape
    R = Rp2 - 2
    y = _conv3x3_strip(xs, w_ref, b_ref)                  # raw conv1 (+bias)
    hraw_ref[0] = y.reshape(R, W, C).astype(hraw_ref.dtype)
    _accumulate_stats(stats_ref, y)


def _pass2_kernel(hs_ref, st1_ref, w_ref, b_ref, h2_ref, stats_ref):
    # hs_ref: (1, R+2, W, C) raw conv1 strip with halo; st1_ref: (1, 2, C) [mean, invstd]
    hs = hs_ref[0].astype(jnp.float32)
    Rp2, W, C = hs.shape
    R = Rp2 - 2
    st = st1_ref[0]                                       # (2, C)
    a = jnp.maximum((hs - st[0:1]) * st[1:2], 0.0)        # IN1 + ReLU (f32 elementwise)
    # TODO(synk): use_dropout=False chosen; stateful Dropout(0.5) not implemented.
    y = _conv3x3_strip(a, w_ref, b_ref)                   # raw conv2 (+bias)
    h2_ref[0] = y.reshape(R, W, C).astype(h2_ref.dtype)
    _accumulate_stats(stats_ref, y)


def _pass3_kernel(x_ref, h2_ref, st2_ref, o_ref):
    # IN2-normalize the raw conv2 strip and add the residual (all f32).
    x = x_ref[0].astype(jnp.float32)                      # (R, W, C)
    h2 = h2_ref[0].astype(jnp.float32)
    st = st2_ref[0]                                       # (2, C)
    o_ref[0] = (x + (h2 - st[0:1]) * st[1:2]).astype(o_ref.dtype)


# -------------------------- host-side plumbing ---------------------------
def _pick_strip_rows(H):
    """Largest divisor of H that is <= min(8, H//2): small VMEM footprint,
    multiple strips per image (extra parallel grid points), M = R*W for the MXU."""
    target = max(1, min(8, H // 2))
    for r in range(target, 0, -1):
        if H % r == 0:
            return r
    return 1


def _strips_with_halo(a, strip_rows):
    """(N, H, W, C) -> (N*S, R+2, W, C): H-strips with a 1-row reflect halo."""
    N, H, W, C = a.shape
    R = strip_rows
    S = H // R
    ap = jnp.concatenate([a[:, 1:2], a, a[:, H - 2:H - 1]], axis=1)   # reflect-pad H
    strips = jnp.stack([ap[:, s * R:s * R + R + 2] for s in range(S)], axis=1)
    return strips.reshape(N * S, R + 2, W, C)


def _finalize_stats(raw, hw):
    """raw (N, 2, C) [sum, sumsq] -> (N, 2, C) [mean, 1/sqrt(var+eps)], biased var.
    E[x^2]-E[x]^2 in f32 is adequate here (errors ~1e-5); clamp guards tiny negatives."""
    mean = raw[:, 0, :] / hw
    var = jnp.maximum(raw[:, 1, :] / hw - mean * mean, 0.0)
    inv = lax.rsqrt(var + _EPS)
    return jnp.stack([mean, inv], axis=1)


def resnet_block_forward_nhwc(x, w1, b1, w2, b2, *, strip_rows=None,
                              mxu_dtype=jnp.bfloat16):
    """NHWC-native ResnetBlock forward (preferred entry point).

    x      : (N, H, W, C)
    w1, w2 : (9, C, C) tap-major, each tap (Cin, Cout)
             (from PyTorch OIHW: w.permute(2, 3, 1, 0).reshape(9, C, C))
    b1, b2 : (1, C)
    """
    N, H, W, C = x.shape
    assert H >= 2 and W >= 2, "ReflectionPad2d(1) requires H, W >= 2"
    R = strip_rows if strip_rows is not None else _pick_strip_rows(H)
    assert H % R == 0, "strip_rows must divide H"
    S = H // R
    hw = float(H * W)

    # Weight/bias prep: (9*C, C) im2col layout, MXU dtype (bf16 default; f32 acc
    # inside the kernel). Halves weight HBM->VMEM traffic in bf16. Biases stay f32.
    w1m = w1.reshape(9 * C, C).astype(mxu_dtype)
    w2m = w2.reshape(9 * C, C).astype(mxu_dtype)
    b1f = b1.reshape(1, C).astype(jnp.float32)
    b2f = b2.reshape(1, C).astype(jnp.float32)

    strip_spec = pl.BlockSpec((1, R + 2, W, C), lambda n, s: (n * S + s, 0, 0, 0))
    row_spec = pl.BlockSpec((1, R, W, C), lambda n, s: (n, s, 0, 0))
    # constant index_map -> Pallas DMAs the weights/bias once and keeps them resident
    w_spec = pl.BlockSpec((9 * C, C), lambda n, s: (0, 0))
    b_spec = pl.BlockSpec((1, C), lambda n, s: (0, 0))
    stats_spec = pl.BlockSpec((1, 2, C), lambda n, s: (n, 0, 0))

    conv_params = pltpu.CompilerParams(
        dimension_semantics=("parallel", "arbitrary"),   # strip axis carries IN accumulator
        vmem_limit_bytes=_VMEM_LIMIT_BYTES)

    # ---- pass 1: conv1 (+bias) with fused IN1 statistics -------------------
    h_raw, stats1 = pl.pallas_call(
        _pass1_kernel,
        out_shape=(jax.ShapeDtypeStruct((N, H, W, C), jnp.float32),
                   jax.ShapeDtypeStruct((N, 2, C), jnp.float32)),
        grid_spec=pltpu.PrefetchScalarGridSpec(
            num_scalar_prefetch=0, grid=(N, S),
            in_specs=[strip_spec, w_spec, b_spec],
            out_specs=[row_spec, stats_spec]),
        compiler_params=conv_params,
    )(_strips_with_halo(x, R), w1m, b1f)

    # ---- pass 2: IN1 + ReLU + conv2 (+bias) with fused IN2 statistics ------
    h2_raw, stats2 = pl.pallas_call(
        _pass2_kernel,
        out_shape=(jax.ShapeDtypeStruct((N, H, W, C), jnp.float32),
                   jax.ShapeDtypeStruct((N, 2, C), jnp.float32)),
        grid_spec=pltpu.PrefetchScalarGridSpec(
            num_scalar_prefetch=0, grid=(N, S),
            in_specs=[strip_spec, stats_spec, w_spec, b_spec],
            out_specs=[row_spec, stats_spec]),
        compiler_params=conv_params,
    )(_strips_with_halo(h_raw, R), _finalize_stats(stats1, hw), w2m, b2f)

    # ---- pass 3: IN2 normalize + residual add ------------------------------
    out = pl.pallas_call(
        _pass3_kernel,
        out_shape=jax.ShapeDtypeStruct((N, H, W, C), x.dtype),
        grid_spec=pltpu.PrefetchScalarGridSpec(
            num_scalar_prefetch=0, grid=(N, S),
            in_specs=[row_spec, row_spec, stats_spec],
            out_specs=row_spec),
        compiler_params=pltpu.CompilerParams(
            dimension_semantics=("parallel", "parallel"),
            vmem_limit_bytes=_VMEM_LIMIT_BYTES),
    )(x, h2_raw, _finalize_stats(stats2, hw))
    return out


def resnet_block_forward(x_nchw, w1, b1, w2, b2, **kwargs):
    """PyTorch-layout (NCHW) compatibility wrapper around the NHWC-native path.
    The two transposes below are pure HBM traffic outside the kernels; prefer
    resnet_block_forward_nhwc directly in an NHWC-native model."""
    x = jnp.transpose(x_nchw, (0, 2, 3, 1))
    y = resnet_block_forward_nhwc(x, w1, b1, w2, b2, **kwargs)
    return jnp.transpose(y, (0, 3, 1, 2))


# ---------------- pure-JAX reference (for validation) ----------------
def _reference(x_nchw, w1, b1, w2, b2):
    def reflect_pad(a):  # NHWC
        return jnp.pad(a, ((0, 0), (1, 1), (1, 1), (0, 0)), mode="reflect")

    def conv3x3(a, w, b):  # a: NHWC padded, w: (9, Cin, Cout)
        N, Hp, Wp, C = a.shape
        H, W = Hp - 2, Wp - 2
        acc = jnp.zeros((N, H, W, C), jnp.float32)
        for ky in range(3):
            for kx in range(3):
                patch = a[:, ky:ky + H, kx:kx + W, :]
                acc = acc + jnp.einsum("nhwc,cd->nhwd", patch, w[ky * 3 + kx])
        return acc + b[0]

    def inorm(y):  # NHWC, per (n, c) over (h, w)
        mean = jnp.mean(y, axis=(1, 2), keepdims=True)
        var = jnp.mean((y - mean) ** 2, axis=(1, 2), keepdims=True)
        return (y - mean) * lax.rsqrt(var + _EPS)

    x = jnp.transpose(x_nchw, (0, 2, 3, 1)).astype(jnp.float32)
    h = jnp.maximum(inorm(conv3x3(reflect_pad(x), w1, b1)), 0.0)
    h2 = inorm(conv3x3(reflect_pad(h), w2, b2))
    return jnp.transpose(x + h2, (0, 3, 1, 2))


if __name__ == "__main__":
    N, C, H, W = 2, 4, 16, 16
    key = jax.random.PRNGKey(0)
    kx, kw1, kb1, kw2, kb2 = jax.random.split(key, 5)

    x = jax.random.normal(kx, (N, C, H, W), jnp.float32)
    # deterministic synthetic params; (9, Cin, Cout) tap-major layout
    w1 = jax.random.normal(kw1, (9, C, C), jnp.float32) * 0.1
    b1 = jax.random.normal(kb1, (1, C), jnp.float32) * 0.1
    w2 = jax.random.normal(kw2, (9, C, C), jnp.float32) * 0.1
    b2 = jax.random.normal(kb2, (1, C), jnp.float32) * 0.1

    ref = jax.block_until_ready(_reference(x, w1, b1, w2, b2))

    # f32 MXU path: tight algorithmic check against the pure-JAX reference.
    out_f32 = jax.block_until_ready(
        resnet_block_forward(x, w1, b1, w2, b2, mxu_dtype=jnp.float32))
    assert out_f32.shape == (N, C, H, W)
    assert jnp.allclose(out_f32, ref, atol=1e-4, rtol=1e-4), "f32 path mismatch"

    # default bf16-operand MXU path (f32 accumulation): looser tolerance for
    # bf16 operand rounding, still catches any structural/indexing bug.
    out_bf16 = jax.block_until_ready(resnet_block_forward(x, w1, b1, w2, b2))
    assert out_bf16.shape == (N, C, H, W)
    assert jnp.allclose(out_bf16, ref, atol=1e-1, rtol=1e-1), "bf16 path mismatch"

    print("KERNEL_OK")
</pallas_src>

<mosaic_0001>
module attributes {stable_mosaic.version = 11 : i64} {
  func.func @_pass1_kernel(%arg0: i32, %arg1: i32, %arg2: memref<1x10x16x4xf32, #tpu.memory_space<vmem>>, %arg3: memref<36x4xf32, #tpu.memory_space<vmem>>, %arg4: memref<1x4xf32, #tpu.memory_space<vmem>>, %arg5: memref<1x8x16x4xf32, #tpu.memory_space<vmem>>, %arg6: memref<1x2x4xf32, #tpu.memory_space<vmem>>) attributes {dimension_semantics = [#tpu.dimension_semantics<parallel>, #tpu.dimension_semantics<arbitrary>], iteration_bounds = array<i64: 2, 2>, scalar_prefetch = 0 : i64, scratch_operands = 0 : i64, tpu.core_type = #tpu.core_type<tc>, window_params = [{transform_indices = @transform_0, window_bounds = array<i64: 1, 10, 16, 4>}, {pipeline_mode = #tpu.pipeline_mode<synchronous>, transform_indices = @transform_1, window_bounds = array<i64: 36, 4>}, {pipeline_mode = #tpu.pipeline_mode<synchronous>, transform_indices = @transform_2, window_bounds = array<i64: 1, 4>}, {transform_indices = @transform_3, window_bounds = array<i64: 1, 8, 16, 4>}, {transform_indices = @transform_4, window_bounds = array<i64: 1, 2, 4>}]} {
    %c0 = arith.constant 0 : index
    %c0_0 = arith.constant 0 : index
    %c0_1 = arith.constant 0 : index
    %c0_2 = arith.constant 0 : index
    %0 = vector.load %arg2[%c0, %c0_0, %c0_1, %c0_2] : memref<1x10x16x4xf32, #tpu.memory_space<vmem>>, vector<1x10x16x4xf32>
    %1 = vector.shape_cast %0 : vector<1x10x16x4xf32> to vector<10x16x4xf32>
    %2 = vector.extract_strided_slice %1 {offsets = [0, 1, 0], sizes = [10, 1, 4], strides = [1, 1, 1]} : vector<10x16x4xf32> to vector<10x1x4xf32>
    %3 = vector.extract_strided_slice %1 {offsets = [0, 14, 0], sizes = [10, 1, 4], strides = [1, 1, 1]} : vector<10x16x4xf32> to vector<10x1x4xf32>
    %4 = tpu.concatenate %2, %1, %3 in 1 : vector<10x1x4xf32>, vector<10x16x4xf32>, vector<10x1x4xf32> -> vector<10x18x4xf32>
    %5 = vector.extract_strided_slice %4 {offsets = [0, 0, 0], sizes = [10, 16, 4], strides = [1, 1, 1]} : vector<10x18x4xf32> to vector<10x16x4xf32>
    %6 = vector.extract_strided_slice %4 {offsets = [0, 1, 0], sizes = [10, 16, 4], strides = [1, 1, 1]} : vector<10x18x4xf32> to vector<10x16x4xf32>
    %7 = vector.extract_strided_slice %4 {offsets = [0, 2, 0], sizes = [10, 16, 4], strides = [1, 1, 1]} : vector<10x18x4xf32> to vector<10x16x4xf32>
    %8 = vector.extract_strided_slice %5 {offsets = [0, 0, 0], sizes = [8, 16, 4], strides = [1, 1, 1]} : vector<10x16x4xf32> to vector<8x16x4xf32>
    %9 = vector.shape_cast %8 : vector<8x16x4xf32> to vector<128x4xf32>
    %10 = vector.extract_strided_slice %6 {offsets = [0, 0, 0], sizes = [8, 16, 4], strides = [1, 1, 1]} : vector<10x16x4xf32> to vector<8x16x4xf32>
    %11 = vector.shape_cast %10 : vector<8x16x4xf32> to vector<128x4xf32>
    %12 = vector.extract_strided_slice %7 {offsets = [0, 0, 0], sizes = [8, 16, 4], strides = [1, 1, 1]} : vector<10x16x4xf32> to vector<8x16x4xf32>
    %13 = vector.shape_cast %12 : vector<8x16x4xf32> to vector<128x4xf32>
    %14 = vector.extract_strided_slice %5 {offsets = [1, 0, 0], sizes = [8, 16, 4], strides = [1, 1, 1]} : vector<10x16x4xf32> to vector<8x16x4xf32>
    %15 = vector.shape_cast %14 : vector<8x16x4xf32> to vector<128x4xf32>
    %16 = vector.extract_strided_slice %6 {offsets = [1, 0, 0], sizes = [8, 16, 4], strides = [1, 1, 1]} : vector<10x16x4xf32> to vector<8x16x4xf32>
    %17 = vector.shape_cast %16 : vector<8x16x4xf32> to vector<128x4xf32>
    %18 = vector.extract_strided_slice %7 {offsets = [1, 0, 0], sizes = [8, 16, 4], strides = [1, 1, 1]} : vector<10x16x4xf32> to vector<8x16x4xf32>
    %19 = vector.shape_cast %18 : vector<8x16x4xf32> to vector<128x4xf32>
    %20 = vector.extract_strided_slice %5 {offsets = [2, 0, 0], sizes = [8, 16, 4], strides = [1, 1, 1]} : vector<10x16x4xf32> to vector<8x16x4xf32>
    %21 = vector.shape_cast %20 : vector<8x16x4xf32> to vector<128x4xf32>
    %22 = vector.extract_strided_slice %6 {offsets = [2, 0, 0], sizes = [8, 16, 4], strides = [1, 1, 1]} : vector<10x16x4xf32> to vector<8x16x4xf32>
    %23 = vector.shape_cast %22 : vector<8x16x4xf32> to vector<128x4xf32>
    %24 = vector.extract_strided_slice %7 {offsets = [2, 0, 0], sizes = [8, 16, 4], strides = [1, 1, 1]} : vector<10x16x4xf32> to vector<8x16x4xf32>
    %25 = vector.shape_cast %24 : vector<8x16x4xf32> to vector<128x4xf32>
    %26 = tpu.concatenate %9, %11, %13, %15, %17, %19, %21, %23, %25 in 1 : vector<128x4xf32>, vector<128x4xf32>, vector<128x4xf32>, vector<128x4xf32>, vector<128x4xf32>, vector<128x4xf32>, vector<128x4xf32>, vector<128x4xf32>, vector<128x4xf32> -> vector<128x36xf32>
    %c0_3 = arith.constant 0 : index
    %c0_4 = arith.constant 0 : index
    %27 = vector.load %arg3[%c0_3, %c0_4] : memref<36x4xf32, #tpu.memory_space<vmem>>, vector<36x4xf32>
    %cst = arith.constant dense<0.000000e+00> : vector<128x4xf32>
    %28 = tpu.matmul %26, %27, %cst {dimension_numbers = #tpu.dot_dimension_numbers<[1], [0], [0], [1], [0, 0, 1, 1], [], []>} : vector<128x36xf32>, vector<36x4xf32>, vector<128x4xf32> -> vector<128x4xf32>
    %c0_5 = arith.constant 0 : index
    %c0_6 = arith.constant 0 : index
    %29 = vector.load %arg4[%c0_5, %c0_6] : memref<1x4xf32, #tpu.memory_space<vmem>>, vector<1x4xf32>
    %30 = vector.broadcast %29 : vector<1x4xf32> to vector<128x4xf32>
    %31 = arith.addf %28, %30 : vector<128x4xf32>
    %32 = vector.shape_cast %31 : vector<128x4xf32> to vector<8x16x4xf32>
    %c0_7 = arith.constant 0 : index
    %c0_8 = arith.constant 0 : index
    %c0_9 = arith.constant 0 : index
    %c0_10 = arith.constant 0 : index
    %33 = vector.load %arg5[%c0_7, %c0_8, %c0_9, %c0_10] : memref<1x8x16x4xf32, #tpu.memory_space<vmem>>, vector<1x8x16x4xf32>
    %34 = vector.shape_cast %33 : vector<1x8x16x4xf32> to vector<8x16x4xf32>
    %35 = vector.shape_cast %32 : vector<8x16x4xf32> to vector<1x8x16x4xf32>
    tpu.vector_store %arg5[%c0_7, %c0_8, %c0_9, %c0_10], %35 {strides = array<i32>} : memref<1x8x16x4xf32, #tpu.memory_space<vmem>>, vector<1x8x16x4xf32>,
    %cst_11 = arith.constant dense<0.000000e+00> : vector<4xf32>
    %36 = vector.multi_reduction <add>, %31, %cst_11 [0] : vector<128x4xf32> to vector<4xf32>
    %37 = vector.shape_cast %36 : vector<4xf32> to vector<1x4xf32>
    %38 = arith.mulf %31, %31 : vector<128x4xf32>
    %cst_12 = arith.constant dense<0.000000e+00> : vector<4xf32>
    %39 = vector.multi_reduction <add>, %38, %cst_12 [0] : vector<128x4xf32> to vector<4xf32>
    %40 = vector.shape_cast %39 : vector<4xf32> to vector<1x4xf32>
    %41 = tpu.concatenate %37, %40 in 0 : vector<1x4xf32>, vector<1x4xf32> -> vector<2x4xf32>
    %42 = vector.shape_cast %41 : vector<2x4xf32> to vector<1x2x4xf32>
    %c0_i32 = arith.constant 0 : i32
    %43 = arith.cmpi eq, %arg1, %c0_i32 : i32
    %44 = arith.extui %43 : i1 to i32
    %c0_i32_13 = arith.constant 0 : i32
    %45 = arith.cmpi ne, %44, %c0_i32_13 : i32
    scf.if %45 {
      %cst_20 = arith.constant 0.000000e+00 : f32
      %49 = vector.broadcast %cst_20 : f32 to vector<1x2x4xf32>
      %c0_21 = arith.constant 0 : index
      %c0_22 = arith.constant 0 : index
      %c0_23 = arith.constant 0 : index
      %50 = vector.load %arg6[%c0_21, %c0_22, %c0_23] : memref<1x2x4xf32, #tpu.memory_space<vmem>>, vector<1x2x4xf32>
      tpu.vector_store %arg6[%c0_21, %c0_22, %c0_23], %49 {strides = array<i32>} : memref<1x2x4xf32, #tpu.memory_space<vmem>>, vector<1x2x4xf32>,
    } else {
    }
    %c0_14 = arith.constant 0 : index
    %c0_15 = arith.constant 0 : index
    %c0_16 = arith.constant 0 : index
    %46 = vector.load %arg6[%c0_14, %c0_15, %c0_16] : memref<1x2x4xf32, #tpu.memory_space<vmem>>, vector<1x2x4xf32>
    %47 = arith.addf %46, %42 : vector<1x2x4xf32>
    %c0_17 = arith.constant 0 : index
    %c0_18 = arith.constant 0 : index
    %c0_19 = arith.constant 0 : index
    %48 = vector.load %arg6[%c0_17, %c0_18, %c0_19] : memref<1x2x4xf32, #tpu.memory_space<vmem>>, vector<1x2x4xf32>
    tpu.vector_store %arg6[%c0_17, %c0_18, %c0_19], %47 {strides = array<i32>} : memref<1x2x4xf32, #tpu.memory_space<vmem>>, vector<1x2x4xf32>,
    return
  }
  func.func @transform_0(%arg0: i32, %arg1: i32) -> (i32, i32, i32, i32) {
    %c2_i32 = arith.constant 2 : i32
    %0 = arith.muli %arg0, %c2_i32 : i32
    %1 = arith.addi %0, %arg1 : i32
    %c0_i32 = arith.constant 0 : i32
    %c0_i32_0 = arith.constant 0 : i32
    %c0_i32_1 = arith.constant 0 : i32
    %c0_i32_2 = arith.constant 0 : i32
    return %1, %c0_i32, %c0_i32_0, %c0_i32_1 : i32, i32, i32, i32
  }
  func.func @transform_1(%arg0: i32, %arg1: i32) -> (i32, i32) {
    %c0_i32 = arith.constant 0 : i32
    %c0_i32_0 = arith.constant 0 : i32
    %c0_i32_1 = arith.constant 0 : i32
    return %c0_i32, %c0_i32_0 : i32, i32
  }
  func.func @transform_2(%arg0: i32, %arg1: i32) -> (i32, i32) {
    %c0_i32 = arith.constant 0 : i32
    %c0_i32_0 = arith.constant 0 : i32
    %c0_i32_1 = arith.constant 0 : i32
    return %c0_i32, %c0_i32_0 : i32, i32
  }
  func.func @transform_3(%arg0: i32, %arg1: i32) -> (i32, i32, i32, i32) {
    %c0_i32 = arith.constant 0 : i32
    %c0_i32_0 = arith.constant 0 : i32
    %c0_i32_1 = arith.constant 0 : i32
    return %arg0, %arg1, %c0_i32, %c0_i32_0 : i32, i32, i32, i32
  }
  func.func @transform_4(%arg0: i32, %arg1: i32) -> (i32, i32, i32) {
    %c0_i32 = arith.constant 0 : i32
    %c0_i32_0 = arith.constant 0 : i32
    %c0_i32_1 = arith.constant 0 : i32
    return %arg0, %c0_i32, %c0_i32_0 : i32, i32, i32
  }
}

</mosaic_0001>

<bundles_post_ra>
// kernel: tpu_custom_call.1
= control target key start
LH: loop header
LB: loop body
LE: loop exit
PB: predicated region body
PF: predicated region fallthrough
CT: control target
= control target key end

     0   :  { %10 = vsyncpa [#allocation3], 0  ;;  %s2649_s0 = inlined_call_operand.vmem [shape: f32[4,10,16,4], index: 0, kind: input, shape index: {}]   ;;  %s2650_s1 = inlined_call_operand.vmem [shape: f32[36,4], index: 1, kind: input, shape index: {}]   ;;  %s2651_s2 = inlined_call_operand.vmem [shape: f32[1,4], index: 2, kind: input, shape index: {}]   ;;  %s2652_s3 = inlined_call_operand.vmem [shape: f32[2,16,16,4], index: 3, kind: output, shape index: {0}]   ;;  %s2653_s4 = inlined_call_operand.hbm [shape: f32[2,2,4], index: 4, kind: output, shape index: {1}]  }
   0x1   :  { %12 = vsyncpa [#allocation3 + $0x1], 0  ;;  %s1834_s15 = smov 0   ;;  %s1836_s16 = smov 0  }
   0x2   :  { %s1838_s17 = smov 0   ;;  %s1840_s18 = smov 0  }
   0x3   :  { %s1842_s19 = smov 0   ;;  %s1844_s20 = smov 0  }
   0x4   :  { %s1846_s21 = smov 0   ;;  %s1848_s22 = smov 0  }
   0x5 LB: > { %s1516_s23 = sadd.s32 4294967295, %s1797_s22   ;;  %s1517_s24 = sadd.s32 4294967294, %s1797_s22   ;;  %s1797_s22 = sphi %s1848_s22, %s18_s22   ;;  %s1793_s21 = sphi %s1846_s21, %s2664_s21   ;;  %s1789_s20 = sphi %s1844_s20, %s2663_s20   ;;  %s1785_s19 = sphi %s1842_s19, %s2662_s19   ;;  %s1781_s18 = sphi %s1840_s18, %s2661_s18   ;;  %s1777_s17 = sphi %s1838_s17, %s2660_s17   ;;  %s1773_s16 = sphi %s1836_s16, %s2659_s16   ;;  %s1769_s15 = sphi %s1834_s15, %s2658_s15  }
   0x6   : > { %s27_s25 = sadd.s32 1, %s1789_s20  ;;  %s30_s26 = sadd.s32 1, %s1793_s21 }
   0x7   : > { %p28_p0 = scmp.ge.s32.totalorder %s27_s25, 2  ;;  %p147_p1 = scmp.ne.s32.totalorder %s1777_s17, %s1773_s16 }
   0x8   : > { %p148_p2 = scmp.eq.s32.totalorder %s1516_s23, 3  ;;  %p153_p4 = scmp.ne.s32.totalorder %s1773_s16, %s1769_s15 }
   0x9   : > { %s2666_s25 = smov (%p28_p0, %s27_s25), 0  ;;  %s2668_s26 = smov (!%p28_p0, %s30_s26), %s1793_s21 }
   0xa   : > { %p1883_p3 = por %p148_p2, %p147_p1  ;;  %p32_p5 = scmp.ge.s32.totalorder %s2668_s26, 2 }
   0xb   : > { %p154_p6 = scmp.eq.s32.totalorder %s1517_s24, 3  ;;  %p1522_p7 = scmp.ge.s32.totalorder %s1797_s22, 1 }
   0xc   : > { %p190_p8 = scmp.lt.s32.totalorder %s1797_s22, 5  ;;  %s2670_s26 = smov (%p32_p5, %s2668_s26), 0 }
   0xd   : > { %p1893_p9 = por %p154_p6, %p153_p4  ;;  %s134_s29 = ssub.s32 %s1793_s21, %s2670_s26 }
   0xe   : > { %p191_p10 = pnand %p1522_p7, %p190_p8  ;;  %s137_s30 = sadd.s32 1, %s1777_s17 }
   0xf   : > { %p135_p11 = scmp.eq.s32.totalorder %s134_s29, 0  ;;  %s1524_s6 = sshll.u32 (!%p191_p10), %s1785_s19, 1  ;;  %vm308_vm0 = vcmask (!%p191_p10), 1040384   ;;  %vm464_vm1 = vcmask (!%p191_p10), 1045504   ;;  %vm423_vm2 = vcmask (!%p191_p10), 1046528   ;;  %v1049_v45 = vld [vmem:[%s2650_s1] sm:$0xff] (!%p191_p10) }
  0x10   : > { %194 = sbr.rel (%p191_p10) target bundleno = 660 (0x294), region = 32  ;;  %s229_s7 = sadd.s32 (!%p191_p10), %s1781_s18, %s1524_s6  ;;  %v1050_v46 = vld [vmem:[%s2650_s1 + $0x8] sm:$0xff] (!%p191_p10)  ;;  %v1051_v51 = vld [vmem:[%s2650_s1 + $0x10] sm:$0xff] (!%p191_p10)  ;;  %v1052_v52 = vld [vmem:[%s2650_s1 + $0x18] sm:$0xff] (!%p191_p10)  ;;  %vm1110_vm3 = vcmask (!%p191_p10), 1043456   ;;  %vm913_vm4 = vcmask (!%p191_p10), 31744  }
  0x11   : > { %s1901_s5 = scalar_select %p135_p11, %s1777_s17, %s137_s30  }
  0x12   : > { %p230_p12 = scmp.lt.s32.totalorder (!%p191_p10), %s229_s7, 3  ;;  %s1799_s12 = smov (!%p191_p10), 12   ;;  %v1608_v49 = vpack.c.bf16 (!%p191_p10), %v1050_v46, %v1049_v45  ;;  %v1612_v54 = vpack.c.bf16 (!%p191_p10), %v1052_v52, %v1051_v51  ;;  %v1053_v56 = vld [vmem:[%s2650_s1 + $0x20] sm:$0xf] (!%p191_p10)  ;;  %vm930_vm5 = vcmask (!%p191_p10), 64512   ;;  %vm947_vm6 = vcmask (!%p191_p10), 97280  }
  0x13   : > { %s1800_s13 = smov (!%p191_p10), 8   ;;  %s1801_s14 = smov (!%p191_p10), 4   ;;  %vm964_vm7 = vcmask (!%p191_p10), 130048   ;;  %vm981_vm8 = vcmask (!%p191_p10), 162816   ;;  %vm998_vm9 = vcmask (!%p191_p10), 195584   ;;  %vm1015_vm10 = vcmask (!%p191_p10), 228352  }
  0x14   : > { %s1802_s23 = smov (!%p191_p10), 16   ;;  %s1803_s24 = smov (!%p191_p10), 20   ;;  %1609 = vmatprep.subr.bf16.mxu0 (!%p191_p10), %v1608_v49  ;;  %1616 = vmatprep.subr.bf16.mxu1 (!%p191_p10), %v1608_v49  ;;  %vm1032_vm11 = vcmask (!%p191_p10), 261120   ;;  %vm1061_vm12 = vcmask (!%p191_p10), 293888  }
  0x15   : > { %s2654_s9 = sand.u32 (!%p191_p10), 1, %s1773_s16   ;;  %1611 = vmatpush3.bf16.msra.mxu0 (!%p191_p10), %v1608_v49  ;;  %1619 = vmatpush3.bf16.msra.mxu1 (!%p191_p10), %v1608_v49  ;;  %s1806_s6 = smov (!%p191_p10), 32  }
  0x16   : > { %s1980_s10 = sshll.u32 (!%p191_p10), %s2654_s9, 1  ;;  %1613 = vmatprep.subr.bf16.mxu0 (!%p191_p10), %v1612_v54  ;;  %1617 = vmatprep.subr.bf16.mxu1 (!%p191_p10), %v1612_v54  ;;  %s1805_s9 = smov (!%p191_p10), 28  }
  0x17   : > { %s2672_s7 = smov (!%p230_p12, %s229_s7), 3  ;;  %p238_p13 = scmp.lt.s32.totalorder %s1785_s19, 1 }
  0x18   : > { %s1622_s8 = smul.u32 160, %s2672_s7  ;;  %p1548_p1 = scmp.ne.s32.totalorder %s1781_s18, 0 }
  0x19   : > { %1615 = vmatpush3.bf16.msra.mxu0 %v1612_v54  ;;  %1620 = vmatpush3.bf16.msra.mxu1 %v1612_v54  ;;  %vm1370_vm13 = vcmask (!%p1548_p1), 25600  }
  0x1a   : > { %s1908_s11 = scalar_lea.vmem %s2649_s0, %s1622_s8  ;;  %s1804_s8 = smov 24   ;;  %1582 = vmatprep.subr.msk.mxu0 %vm1110_vm3, %v1053_v56  ;;  %1618 = vmatprep.subr.msk.mxu1 %vm1110_vm3, %v1053_v56 }
  0x1b   : > { %v250_v0 = vld [vmem:[%s1908_s11 + $0x10] sm:$0xff]  ;;  %v251_v1 = vld [vmem:[%s1908_s11 + $0x18] sm:$0xff]  ;;  %v248_v2 = vld [vmem:[%s1908_s11] sm:$0xff] }
  0x1c   : > { %v312_v3 = vrot.slane %v250_v0, 7  ;;  %v313_v4 = vrot.slane %v251_v1, 7  ;;  %v279_v5 = vrot.slane %v250_v0, 1  ;;  %v249_v6 = vld [vmem:[%s1908_s11 + $0x8] sm:$0xff]  ;;  %v278_v7 = vrot.slane %v248_v2, 1  ;;  %v252_v36 = vld [vmem:[%s1908_s11 + $0x20] sm:$0xff] }
  0x1d   : > { %v309_v8 = vrot.slane %v248_v2, 7  ;;  %v310_v9 = vrot.slane %v249_v6, 7  ;;  %v367_v10 = vrot.slane %v249_v6, 5  ;;  %v368_v20 = vrot.slane %v251_v1, 5  ;;  %v253_v37 = vld [vmem:[%s1908_s11 + $0x28] sm:$0xff]  ;;  %1583 = vmatpush3.msk.msra.mxu0 %vm1110_vm3, %v1053_v56  ;;  %1621 = vmatpush3.msk.msra.mxu1 %vm1110_vm3, %v1053_v56  ;;  %v254_v0 = vld [vmem:[%s1908_s11 + $0x30] sm:$0xff] }
  0x1e   : > { %v1915_v11 = vsel %vm308_vm0, %v312_v3, %v313_v4  ;;  %v1918_v12 = vsel %vm308_vm0, %v279_v5, %v312_v3  ;;  %v280_v38 = vrot.slane %v252_v36, 1  ;;  %v315_v39 = vrot.slane %v252_v36, 7  ;;  %v255_v1 = vld [vmem:[%s1908_s11 + $0x38] sm:$0xff] }
  0x1f   : > { %627 = vrot.lane.b32.xlu1 %v1915_v11, %s1799_s12  ;;  %625 = vrot.lane.b32.xlu0 %v1918_v12, %s1799_s12  ;;  %v1925_v13 = vsel %vm308_vm0, %v309_v8, %v310_v9  ;;  %v1928_v14 = vsel %vm308_vm0, %v278_v7, %v309_v8  ;;  %v397_v15 = vsel %vm308_vm0, %v310_v9, %v367_v10  ;;  %v429_v27 = vrot.slane %v1918_v12, 1  ;;  %v259_v45 = vld [vmem:[%s1908_s11 + $0x58] sm:$0xff] }
  0x20   : > { %v465_v16 = vrot.slane %v1928_v14, 2  ;;  %v466_v17 = vrot.slane %v1925_v13, 2  ;;  %v424_v18 = vrot.slane %v1928_v14, 1  ;;  %v425_v19 = vrot.slane %v1925_v13, 1 }
  0x21   : > { %v468_v21 = vrot.slane %v397_v15, 2  ;;  %v427_v22 = vrot.slane %v397_v15, 1  ;;  %v430_v28 = vrot.slane %v1915_v11, 1  ;;  %v398_v29 = vsel %vm308_vm0, %v313_v4, %v368_v20 }
  0x22   : > { %v467_v23 = vsel %vm464_vm1, %v465_v16, %v466_v17  ;;  %v426_v24 = vsel %vm423_vm2, %v424_v18, %v425_v19  ;;  %v470_v31 = vrot.slane %v1918_v12, 2  ;;  %v471_v32 = vrot.slane %v1915_v11, 2 }
  0x23   : > { %577 = vrot.lane.b32.xlu1 %v467_v23, %s1800_s13  ;;  %529 = vrot.lane.b32.xlu0 %v426_v24, %s1801_s14  ;;  %v469_v25 = vsel %vm464_vm1, %v466_v17, %v468_v21  ;;  %v428_v26 = vsel %vm423_vm2, %v425_v19, %v427_v22  ;;  %v431_v30 = vsel %vm423_vm2, %v429_v27, %v430_v28  ;;  %v432_v33 = vrot.slane %v398_v29, 1  ;;  %v256_v23 = vld [vmem:[%s1908_s11 + $0x40] sm:$0xff]  ;;  %v257_v24 = vld [vmem:[%s1908_s11 + $0x48] sm:$0xff] }
  0x24   : > { %v472_v34 = vsel %vm464_vm1, %v470_v31, %v471_v32  ;;  %v473_v40 = vrot.slane %v398_v29, 2  ;;  %v316_v41 = vrot.slane %v253_v37, 7  ;;  %v1960_v42 = vsel %vm308_vm0, %v280_v38, %v315_v39 }
  0x25   : > { %v433_v35 = vsel %vm423_vm2, %v430_v28, %v432_v33  ;;  %v434_v47 = vrot.slane %v1960_v42, 1  ;;  %v369_v50 = vrot.slane %v253_v37, 5  ;;  %v475_v57 = vrot.slane %v1960_v42, 2 }
  0x26   : > { %v474_v43 = vsel %vm464_vm1, %v471_v32, %v473_v40  ;;  %v1964_v44 = vsel %vm308_vm0, %v315_v39, %v316_v41  ;;  %v281_v2 = vrot.slane %v254_v0, 1  ;;  %v318_v3 = vrot.slane %v254_v0, 7 }
  0x27   : > { %579 = vrot.lane.b32.xlu1 %v469_v25, %s1800_s13  ;;  %531 = vrot.lane.b32.xlu0 %v428_v26, %s1801_s14  ;;  %v435_v48 = vrot.slane %v1964_v44, 1  ;;  %v399_v55 = vsel %vm308_vm0, %v316_v41, %v369_v50  ;;  %v476_v58 = vrot.slane %v1964_v44, 2  ;;  %v319_v4 = vrot.slane %v255_v1, 7 }
  0x28   : > { %v437_v59 = vrot.slane %v399_v55, 1  ;;  %v478_v62 = vrot.slane %v399_v55, 2  ;;  %v2018_v5 = vsel %vm308_vm0, %v281_v2, %v318_v3  ;;  %v370_v9 = vrot.slane %v255_v1, 5 }
  0x29   : > { %v436_v53 = vsel %vm423_vm2, %v434_v47, %v435_v48  ;;  %v477_v60 = vsel %vm464_vm1, %v475_v57, %v476_v58  ;;  %v2021_v6 = vsel %vm308_vm0, %v318_v3, %v319_v4  ;;  %v439_v7 = vrot.slane %v2018_v5, 1 }
  0x2a   : > { %v438_v61 = vsel %vm423_vm2, %v435_v48, %v437_v59  ;;  %v479_v63 = vsel %vm464_vm1, %v476_v58, %v478_v62  ;;  %v440_v8 = vrot.slane %v2021_v6, 1  ;;  %v400_v15 = vsel %vm308_vm0, %v319_v4, %v370_v9 }
  0x2b   : > { %533 = vrot.lane.b32.xlu1 %v431_v30, %s1801_s14  ;;  %673 = vrot.lane.b32.xlu0 %v431_v30, %s1802_s23  ;;  %v480_v16 = vrot.slane %v2018_v5, 2  ;;  %v481_v17 = vrot.slane %v2021_v6, 2  ;;  %v442_v18 = vrot.slane %v400_v15, 1  ;;  %v483_v21 = vrot.slane %v400_v15, 2 }
  0x2c   : > { %v441_v10 = vsel %vm423_vm2, %v439_v7, %v440_v8  ;;  %v282_v25 = vrot.slane %v256_v23, 1  ;;  %v321_v26 = vrot.slane %v256_v23, 7  ;;  %v322_v27 = vrot.slane %v257_v24, 7 }
  0x2d   : > { %v482_v19 = vsel %vm464_vm1, %v480_v16, %v481_v17  ;;  %v443_v20 = vsel %vm423_vm2, %v440_v8, %v442_v18  ;;  %v484_v22 = vsel %vm464_vm1, %v481_v17, %v483_v21  ;;  %v371_v32 = vrot.slane %v257_v24, 5  ;;  %v260_v21 = vld [vmem:[%s1908_s11 + $0x60] sm:$0xff] }
  0x2e   : > { %v2055_v28 = vsel %vm308_vm0, %v282_v25, %v321_v26  ;;  %v2058_v29 = vsel %vm308_vm0, %v321_v26, %v322_v27  ;;  %v325_v50 = vrot.slane %v259_v45, 7  ;;  %v372_v59 = vrot.slane %v259_v45, 5 }
  0x2f   : > { %721 = vrot.lane.b32.xlu1 %v472_v34, %s1803_s24  ;;  %675 = vrot.lane.b32.xlu0 %v433_v35, %s1802_s23  ;;  %v444_v30 = vrot.slane %v2055_v28, 1  ;;  %v445_v31 = vrot.slane %v2058_v29, 1  ;;  %v486_v36 = vrot.slane %v2058_v29, 2  ;;  %v284_v24 = vrot.slane %v260_v21, 1 }
  0x30   : > { %v327_v25 = vrot.slane %v260_v21, 7 }
  0x31   : > { %v446_v33 = vsel %vm423_vm2, %v444_v30, %v445_v31 }
  0x33   : > { %581 = vrot.lane.b32.xlu1 %v472_v34, %s1800_s13  ;;  %535 = vrot.lane.b32.xlu0 %v433_v35, %s1801_s14  ;;  %v401_v34 = vsel %vm308_vm0, %v322_v27, %v371_v32  ;;  %v485_v35 = vrot.slane %v2055_v28, 2 }
  0x34   : > { %v447_v37 = vrot.slane %v401_v34, 1  ;;  %v488_v40 = vrot.slane %v401_v34, 2 }
  0x35   : > { %v487_v38 = vsel %vm464_vm1, %v485_v35, %v486_v36 }
  0x36   : > { %v448_v39 = vsel %vm423_vm2, %v445_v31, %v447_v37  ;;  %v489_v41 = vsel %vm464_vm1, %v486_v36, %v488_v40 }
  0x37   : > { %769 = vrot.lane.b32.xlu1 %v1960_v42, %s1804_s8  ;;  %723 = vrot.lane.b32.xlu0 %v474_v43, %s1803_s24 }
  0x3b   : > { %629 = vrot.lane.b32.xlu1 %v1960_v42, %s1799_s12  ;;  %583 = vrot.lane.b32.xlu0 %v474_v43, %s1800_s13  ;;  %v258_v43 = vld [vmem:[%s1908_s11 + $0x50] sm:$0xff] }
  0x3c   : > { %v283_v46 = vrot.slane %v258_v43, 1  ;;  %v324_v47 = vrot.slane %v258_v43, 7 }
  0x3e   : > { %v2096_v51 = vsel %vm308_vm0, %v283_v46, %v324_v47  ;;  %v2099_v54 = vsel %vm308_vm0, %v324_v47, %v325_v50 }
  0x3f   : > { %817 = vrot.lane.b32.xlu1 %v436_v53, %s1805_s9  ;;  %771 = vrot.lane.b32.xlu0 %v1964_v44, %s1804_s8  ;;  %v449_v55 = vrot.slane %v2096_v51, 1  ;;  %v450_v56 = vrot.slane %v2099_v54, 1  ;;  %v490_v0 = vrot.slane %v2096_v51, 2  ;;  %v491_v1 = vrot.slane %v2099_v54, 2 }
  0x41   : > { %v492_v7 = vsel %vm464_vm1, %v490_v0, %v491_v1 }
  0x43   : > { %677 = vrot.lane.b32.xlu1 %v436_v53, %s1802_s23  ;;  %631 = vrot.lane.b32.xlu0 %v1964_v44, %s1799_s12 }
  0x47   : > { %865 = vrot.lane.b32.xlu1 %v477_v60, %s1806_s6  ;;  %819 = vrot.lane.b32.xlu0 %v438_v61, %s1805_s9 }
  0x4b   : > { %679 = vrot.lane.b32.xlu1 %v438_v61, %s1802_s23  ;;  %537 = vrot.lane.b32.xlu0 %v436_v53, %s1801_s14 }
  0x4f   : > { %867 = vrot.lane.b32.xlu1 %v479_v63, %s1806_s6  ;;  %725 = vrot.lane.b32.xlu0 %v477_v60, %s1803_s24 }
  0x53   : > { %585 = vrot.lane.b32.xlu1 %v477_v60, %s1800_s13  ;;  %539 = vrot.lane.b32.xlu0 %v438_v61, %s1801_s14  ;;  %v451_v60 = vsel %vm423_vm2, %v449_v55, %v450_v56 }
  0x57   : > { %773 = vrot.lane.b32.xlu1 %v2018_v5, %s1804_s8  ;;  %727 = vrot.lane.b32.xlu0 %v479_v63, %s1803_s24 }
  0x5b   : > { %633 = vrot.lane.b32.xlu1 %v2018_v5, %s1799_s12  ;;  %587 = vrot.lane.b32.xlu0 %v479_v63, %s1800_s13  ;;  %v402_v63 = vsel %vm308_vm0, %v325_v50, %v372_v59 }
  0x5c   : > { %v452_v2 = vrot.slane %v402_v63, 1  ;;  %v493_v15 = vrot.slane %v402_v63, 2 }
  0x5e   : > { %v453_v8 = vsel %vm423_vm2, %v450_v56, %v452_v2  ;;  %v494_v18 = vsel %vm464_vm1, %v491_v1, %v493_v15 }
  0x5f   : > { %821 = vrot.lane.b32.xlu1 %v441_v10, %s1805_s9  ;;  %775 = vrot.lane.b32.xlu0 %v2021_v6, %s1804_s8 }
  0x63   : > { %681 = vrot.lane.b32.xlu1 %v441_v10, %s1802_s23  ;;  %635 = vrot.lane.b32.xlu0 %v2021_v6, %s1799_s12 }
  0x67   : > { %869 = vrot.lane.b32.xlu1 %v482_v19, %s1806_s6  ;;  %823 = vrot.lane.b32.xlu0 %v443_v20, %s1805_s9 }
  0x6b   : > { %683 = vrot.lane.b32.xlu1 %v443_v20, %s1802_s23  ;;  %541 = vrot.lane.b32.xlu0 %v441_v10, %s1801_s14 }
  0x6f   : > { %871 = vrot.lane.b32.xlu1 %v484_v22, %s1806_s6  ;;  %729 = vrot.lane.b32.xlu0 %v482_v19, %s1803_s24 }
  0x73   : > { %589 = vrot.lane.b32.xlu1 %v482_v19, %s1800_s13  ;;  %543 = vrot.lane.b32.xlu0 %v443_v20, %s1801_s14 }
  0x77   : > { %777 = vrot.lane.b32.xlu1 %v2055_v28, %s1804_s8  ;;  %731 = vrot.lane.b32.xlu0 %v484_v22, %s1803_s24 }
  0x7b   : > { %637 = vrot.lane.b32.xlu1 %v2055_v28, %s1799_s12  ;;  %591 = vrot.lane.b32.xlu0 %v484_v22, %s1800_s13  ;;  %v261_v22 = vld [vmem:[%s1908_s11 + $0x68] sm:$0xff] }
  0x7c   : > { %v328_v30 = vrot.slane %v261_v22, 7 }
  0x7e   : > { %v2159_v35 = vsel %vm308_vm0, %v327_v25, %v328_v30 }
  0x7f   : > { %825 = vrot.lane.b32.xlu1 %v446_v33, %s1805_s9  ;;  %779 = vrot.lane.b32.xlu0 %v2058_v29, %s1804_s8 }
  0x83   : > { %685 = vrot.lane.b32.xlu1 %v446_v33, %s1802_s23  ;;  %639 = vrot.lane.b32.xlu0 %v2058_v29, %s1799_s12 }
  0x87   : > { %873 = vrot.lane.b32.xlu1 %v487_v38, %s1806_s6  ;;  %827 = vrot.lane.b32.xlu0 %v448_v39, %s1805_s9 }
  0x8b   : > { %687 = vrot.lane.b32.xlu1 %v448_v39, %s1802_s23  ;;  %545 = vrot.lane.b32.xlu0 %v446_v33, %s1801_s14 }
  0x8f   : > { %875 = vrot.lane.b32.xlu1 %v489_v41, %s1806_s6  ;;  %733 = vrot.lane.b32.xlu0 %v487_v38, %s1803_s24 }
  0x91   : > { %v2089_v48 = vpop.permute.xlu1 %627  ;;  %v2091_v49 = vpop.permute.xlu0 %625 }
  0x93   : > { %593 = vrot.lane.b32.xlu1 %v487_v38, %s1800_s13  ;;  %547 = vrot.lane.b32.xlu0 %v448_v39, %s1801_s14 }
  0x95   : > { %v578_v52 = vpop.permute.xlu1 %577  ;;  %v530_v53 = vpop.permute.xlu0 %529 }
  0x96   : > { %v914_v23 = vsel %vm913_vm4, %v1928_v14, %v530_v53  ;;  %v2150_v14 = vsel %vm308_vm0, %v284_v24, %v327_v25  ;;  %v263_v24 = vld [vmem:[%s1908_s11 + $0x78] sm:$0xff] }
  0x97   : > { %781 = vrot.lane.b32.xlu1 %v2096_v51, %s1804_s8  ;;  %735 = vrot.lane.b32.xlu0 %v489_v41, %s1803_s24  ;;  %v931_v31 = vsel %vm930_vm5, %v914_v23, %v578_v52  ;;  %v454_v40 = vrot.slane %v2150_v14, 1  ;;  %v262_v23 = vld [vmem:[%s1908_s11 + $0x70] sm:$0xff] }
  0x98   : > { %v948_v32 = vsel %vm947_vm6, %v931_v31, %v2091_v49  ;;  %v285_v25 = vrot.slane %v262_v23, 1  ;;  %v331_v31 = vrot.slane %v263_v24, 7 }
  0x99   : > { %v2106_v57 = vpop.permute.xlu1 %579  ;;  %v532_v58 = vpop.permute.xlu0 %531 }
  0x9a   : > { %v915_v37 = vsel %vm913_vm4, %v1925_v13, %v532_v58  ;;  %v373_v13 = vrot.slane %v261_v22, 5 }
  0x9b   : > { %641 = vrot.lane.b32.xlu1 %v2096_v51, %s1799_s12  ;;  %595 = vrot.lane.b32.xlu0 %v489_v41, %s1800_s13  ;;  %v455_v41 = vrot.slane %v2159_v35, 1  ;;  %v932_v47 = vsel %vm930_vm5, %v915_v37, %v2106_v57 }
  0x9c   : > { %v949_v52 = vsel %vm947_vm6, %v932_v47, %v2089_v48  ;;  %v403_v56 = vsel %vm308_vm0, %v328_v30, %v373_v13  ;;  %v495_v48 = vrot.slane %v2150_v14, 2  ;;  %v374_v47 = vrot.slane %v263_v24, 5 }
  0x9d   : > { %v2112_v61 = vpop.permute.xlu1 %533  ;;  %v674_v62 = vpop.permute.xlu0 %673  ;;  %v456_v50 = vsel %vm423_vm2, %v454_v40, %v455_v41  ;;  %v498_v15 = vrot.slane %v403_v56, 2 }
  0x9e   : > { %v965_v36 = vsel %vm964_vm7, %v948_v32, %v674_v62  ;;  %v457_v62 = vrot.slane %v403_v56, 1  ;;  %v916_v32 = vsel %vm913_vm4, %v1918_v12, %v2112_v61 }
  0x9f   : > { %829 = vrot.lane.b32.xlu1 %v451_v60, %s1805_s9  ;;  %783 = vrot.lane.b32.xlu0 %v2099_v54, %s1804_s8 }
  0xa1   : > { %v722_v3 = vpop.permute.xlu1 %721  ;;  %v2120_v4 = vpop.permute.xlu0 %675 }
  0xa2   : > { %v982_v38 = vsel %vm981_vm8, %v965_v36, %v722_v3  ;;  %v966_v57 = vsel %vm964_vm7, %v949_v52, %v2120_v4  ;;  %v458_v4 = vsel %vm423_vm2, %v455_v41, %v457_v62 }
  0xa3   : > { %689 = vrot.lane.b32.xlu1 %v451_v60, %s1802_s23  ;;  %643 = vrot.lane.b32.xlu0 %v2099_v54, %s1799_s12 }
  0xa5   : > { %v2127_v9 = vpop.permute.xlu1 %581  ;;  %v2129_v10 = vpop.permute.xlu0 %535 }
  0xa6   : > { %v933_v36 = vsel %vm930_vm5, %v916_v32, %v2127_v9 }
  0xa7   : > { %877 = vrot.lane.b32.xlu1 %v492_v7, %s1806_s6  ;;  %831 = vrot.lane.b32.xlu0 %v453_v8, %s1805_s9 }
  0xa9   : > { %v770_v16 = vpop.permute.xlu1 %769  ;;  %v724_v17 = vpop.permute.xlu0 %723 }
  0xaa   : > { %v999_v39 = vsel %vm998_vm9, %v982_v38, %v770_v16  ;;  %v983_v58 = vsel %vm981_vm8, %v966_v57, %v724_v17 }
  0xab   : > { %691 = vrot.lane.b32.xlu1 %v453_v8, %s1802_s23  ;;  %549 = vrot.lane.b32.xlu0 %v451_v60, %s1801_s14  ;;  %v496_v60 = vrot.slane %v2159_v35, 2 }
  0xad   : > { %v2136_v19 = vpop.permute.xlu1 %629  ;;  %v2138_v20 = vpop.permute.xlu0 %583  ;;  %v497_v3 = vsel %vm464_vm1, %v495_v48, %v496_v60 }
  0xae   : > { %v950_v38 = vsel %vm947_vm6, %v933_v36, %v2136_v19 }
  0xaf   : > { %879 = vrot.lane.b32.xlu1 %v494_v18, %s1806_s6  ;;  %737 = vrot.lane.b32.xlu0 %v492_v7, %s1803_s24 }
  0xb1   : > { %v818_v26 = vpop.permute.xlu1 %817  ;;  %v772_v27 = vpop.permute.xlu0 %771 }
  0xb2   : > { %v1016_v43 = vsel %vm1015_vm10, %v999_v39, %v818_v26  ;;  %v1000_v59 = vsel %vm998_vm9, %v983_v58, %v772_v27  ;;  %v330_v26 = vrot.slane %v262_v23, 7 }
  0xb3   : > { %597 = vrot.lane.b32.xlu1 %v492_v7, %s1800_s13  ;;  %551 = vrot.lane.b32.xlu0 %v453_v8, %s1801_s14 }
  0xb4   : > { %v2229_v37 = vsel %vm308_vm0, %v285_v25, %v330_v26  ;;  %v2238_v41 = vsel %vm308_vm0, %v330_v26, %v331_v31  ;;  %v264_v25 = vld [vmem:[%s1908_s11 + $0x80] sm:$0xff]  ;;  %v265_v26 = vld [vmem:[%s1908_s11 + $0x88] sm:$0xff] }
  0xb5   : > { %v2154_v33 = vpop.permute.xlu1 %677  ;;  %v2156_v34 = vpop.permute.xlu0 %631  ;;  %v459_v19 = vrot.slane %v2229_v37, 1  ;;  %v501_v48 = vrot.slane %v2238_v41, 2  ;;  %v334_v36 = vrot.slane %v265_v26, 7 }
  0xb6   : > { %v967_v12 = vsel %vm964_vm7, %v950_v38, %v2154_v33 }
  0xb7   : > { %785 = vrot.lane.b32.xlu1 %v2150_v14, %s1804_s8  ;;  %739 = vrot.lane.b32.xlu0 %v494_v18, %s1803_s24 }
  0xb9   : > { %v866_v45 = vpop.permute.xlu1 %865  ;;  %v820_v46 = vpop.permute.xlu0 %819 }
  0xba   : > { %v1033_v49 = vsel %vm1032_vm11, %v1016_v43, %v866_v45  ;;  %v1017_v63 = vsel %vm1015_vm10, %v1000_v59, %v820_v46  ;;  %v460_v43 = vrot.slane %v2238_v41, 1 }
  0xbb   : > { %645 = vrot.lane.b32.xlu1 %v2150_v14, %s1799_s12  ;;  %599 = vrot.lane.b32.xlu0 %v494_v18, %s1800_s13  ;;  %v499_v18 = vsel %vm464_vm1, %v496_v60, %v498_v15 }
  0xbc   : > { %1584 = vmatprep.mubr.msk.f32.mxu0 %vm1061_vm12, %v1033_v49  ;;  %v917_v49 = vsel %vm913_vm4, %v1915_v11, %v2129_v10  ;;  %v461_v52 = vsel %vm423_vm2, %v459_v19, %v460_v43  ;;  %v404_v11 = vsel %vm308_vm0, %v331_v31, %v374_v47 }
  0xbd   : > { %v2182_v53 = vpop.permute.xlu1 %679  ;;  %v2184_v55 = vpop.permute.xlu0 %537  ;;  %v462_v60 = vrot.slane %v404_v11, 1  ;;  %v503_v15 = vrot.slane %v404_v11, 2 }
  0xbe   : > { %v918_v38 = vsel %vm913_vm4, %v1960_v42, %v2184_v55 }
  0xbf   : > { %833 = vrot.lane.b32.xlu1 %v456_v50, %s1805_s9  ;;  %787 = vrot.lane.b32.xlu0 %v2159_v35, %s1804_s8 }
  0xc1   : > { %v868_v0 = vpop.permute.xlu1 %867  ;;  %v726_v1 = vpop.permute.xlu0 %725 }
  0xc2   : > { %v1034_v2 = vsel %vm1032_vm11, %v1017_v63, %v868_v0  ;;  %v984_v61 = vsel %vm981_vm8, %v967_v12, %v726_v1 }
  0xc3   : > { %693 = vrot.lane.b32.xlu1 %v456_v50, %s1802_s23  ;;  %647 = vrot.lane.b32.xlu0 %v2159_v35, %s1799_s12 }
  0xc4   : > { %1585 = vmatmul.mubr.msk.f32.vlgmr.msra.gmra.mrb[0].mxu0 %vm1061_vm12, %v1034_v2  ;;  %v463_v2 = vsel %vm423_vm2, %v460_v43, %v462_v60 }
  0xc5   : > { %v2204_v7 = vpop.permute.xlu1 %585  ;;  %v2206_v8 = vpop.permute.xlu0 %539 }
  0xc6   : > { %v935_v12 = vsel %vm930_vm5, %v918_v38, %v2204_v7 }
  0xc7   : > { %881 = vrot.lane.b32.xlu1 %v497_v3, %s1806_s6  ;;  %835 = vrot.lane.b32.xlu0 %v458_v4, %s1805_s9 }
  0xc9   : > { %v774_v16 = vpop.permute.xlu1 %773  ;;  %v728_v17 = vpop.permute.xlu0 %727 }
  0xca   : > { %v1001_v9 = vsel %vm998_vm9, %v984_v61, %v774_v16 }
  0xcb   : > { %695 = vrot.lane.b32.xlu1 %v458_v4, %s1802_s23  ;;  %553 = vrot.lane.b32.xlu0 %v456_v50, %s1801_s14  ;;  %v934_v50 = vsel %vm930_vm5, %v917_v49, %v2138_v20  ;;  %v375_v49 = vrot.slane %v265_v26, 5 }
  0xcc   : > { %v951_v56 = vsel %vm947_vm6, %v934_v50, %v2156_v34  ;;  %v500_v34 = vrot.slane %v2229_v37, 2 }
  0xcd   : > { %v2213_v21 = vpop.permute.xlu1 %633  ;;  %v2215_v22 = vpop.permute.xlu0 %587  ;;  %v968_v10 = vsel %vm964_vm7, %v951_v56, %v2182_v53 }
  0xce   : > { %v985_v59 = vsel %vm981_vm8, %v968_v10, %v728_v17  ;;  %v502_v1 = vsel %vm464_vm1, %v500_v34, %v501_v48 }
  0xcf   : > { %883 = vrot.lane.b32.xlu1 %v499_v18, %s1806_s6  ;;  %741 = vrot.lane.b32.xlu0 %v497_v3, %s1803_s24 }
  0xd1   : > { %v822_v27 = vpop.permute.xlu1 %821  ;;  %v776_v30 = vpop.permute.xlu0 %775 }
  0xd2   : > { %v1018_v45 = vsel %vm1015_vm10, %v1001_v9, %v822_v27  ;;  %v1002_v20 = vsel %vm998_vm9, %v985_v59, %v776_v30  ;;  %v286_v27 = vrot.slane %v264_v25, 1  ;;  %v333_v30 = vrot.slane %v264_v25, 7 }
  0xd3   : > { %601 = vrot.lane.b32.xlu1 %v497_v3, %s1800_s13  ;;  %555 = vrot.lane.b32.xlu0 %v458_v4, %s1801_s14  ;;  %v952_v9 = vsel %vm947_vm6, %v935_v12, %v2213_v21 }
  0xd4   : > { %v395_v61 = vsel %vm308_vm0, %v286_v27, %v333_v30 }
  0xd5   : > { %v2233_v39 = vpop.permute.xlu1 %681  ;;  %v2235_v40 = vpop.permute.xlu0 %635 }
  0xd6   : > { %v969_v42 = vsel %vm964_vm7, %v952_v9, %v2233_v39  ;;  %v919_v39 = vsel %vm913_vm4, %v1964_v44, %v2206_v8  ;;  %v405_v44 = vsel %vm308_vm0, %v334_v36, %v375_v49 }
  0xd7   : > { %789 = vrot.lane.b32.xlu1 %v2229_v37, %s1804_s8  ;;  %743 = vrot.lane.b32.xlu0 %v499_v18, %s1803_s24 }
  0xd9   : > { %v870_v46 = vpop.permute.xlu1 %869  ;;  %v824_v13 = vpop.permute.xlu0 %823 }
  0xda   : > { %v1035_v33 = vsel %vm1032_vm11, %v1018_v45, %v870_v46  ;;  %v1019_v62 = vsel %vm1015_vm10, %v1002_v20, %v824_v13  ;;  %v335_v45 = vsel %vm308_vm0, %v333_v30, %v334_v36  ;;  %v507_v46 = vrot.slane %v395_v61, 1 }
  0xdb   : > { %649 = vrot.lane.b32.xlu1 %v2229_v37, %s1799_s12  ;;  %603 = vrot.lane.b32.xlu0 %v499_v18, %s1800_s13  ;;  %v504_v18 = vsel %vm464_vm1, %v501_v48, %v503_v15  ;;  %v508_v13 = vrot.slane %v335_v45, 1  ;;  %v513_v34 = vrot.slane %v335_v45, 2  ;;  %v510_v48 = vrot.slane %v405_v44, 1  ;;  %v266_v15 = vld [vmem:[%s1908_s11 + $0x90] sm:$0xff] }
  0xdc   : > { %1587 = vmatprep.mubr.msk.f32.mxu0 %vm1061_vm12, %v1035_v33  ;;  %v336_v26 = vrot.slane %v266_v15, 7 }
  0xdd   : > { %v2263_v57 = vpop.permute.xlu1 %683  ;;  %v2265_v58 = vpop.permute.xlu0 %541  ;;  %v509_v56 = vsel %vm423_vm2, %v507_v46, %v508_v13 }
  0xdf   : > { %837 = vrot.lane.b32.xlu1 %v461_v52, %s1805_s9  ;;  %791 = vrot.lane.b32.xlu0 %v2238_v41, %s1804_s8 }
  0xe1   : > { %v872_v63 = vpop.permute.xlu1 %871  ;;  %v730_v0 = vpop.permute.xlu0 %729 }
  0xe2   : > { %v1036_v53 = vsel %vm1032_vm11, %v1019_v62, %v872_v63  ;;  %v986_v55 = vsel %vm981_vm8, %v969_v42, %v730_v0 }
  0xe3   : > { %697 = vrot.lane.b32.xlu1 %v461_v52, %s1802_s23  ;;  %651 = vrot.lane.b32.xlu0 %v2238_v41, %s1799_s12 }
  0xe4   : > { %1588 = vmatmul.mubr.msk.f32.gmra.mrb[2].mxu0 %vm1061_vm12, %v1036_v53  ;;  %v511_v53 = vsel %vm423_vm2, %v508_v13, %v510_v48  ;;  %v920_v13 = vsel %vm913_vm4, %v2018_v5, %v2265_v58 }
  0xe5   : > { %v2285_v3 = vpop.permute.xlu1 %589  ;;  %v2287_v4 = vpop.permute.xlu0 %543 }
  0xe7   : > { %885 = vrot.lane.b32.xlu1 %v502_v1, %s1806_s6  ;;  %839 = vrot.lane.b32.xlu0 %v463_v2, %s1805_s9 }
  0xe9   : > { %v778_v16 = vpop.permute.xlu1 %777  ;;  %v732_v17 = vpop.permute.xlu0 %731 }
  0xea   : > { %v1003_v7 = vsel %vm998_vm9, %v986_v55, %v778_v16  ;;  %v267_v16 = vld [vmem:[%s1908_s11 + $0x98] sm:$0xff]  ;;  %s1526_s11 = sshll.u32 %s1781_s18, 3 }
  0xeb   : > { %699 = vrot.lane.b32.xlu1 %v463_v2, %s1802_s23  ;;  %557 = vrot.lane.b32.xlu0 %v461_v52, %s1801_s14  ;;  %v936_v52 = vsel %vm930_vm5, %v919_v39, %v2215_v22  ;;  %v337_v27 = vrot.slane %v267_v16, 7  ;;  %v376_v30 = vrot.slane %v267_v16, 5  ;;  %p240_p0 = scmp.lt.s32.totalorder %s1526_s11, 15 }
  0xec   : > { %v953_v11 = vsel %vm947_vm6, %v936_v52, %v2235_v40  ;;  %v512_v40 = vrot.slane %v395_v61, 2 }
  0xed   : > { %v2294_v23 = vpop.permute.xlu1 %637  ;;  %v2296_v24 = vpop.permute.xlu0 %591  ;;  %v970_v8 = vsel %vm964_vm7, %v953_v11, %v2263_v57  ;;  %v338_v12 = vsel %vm308_vm0, %v336_v26, %v337_v27  ;;  %v406_v9 = vsel %vm308_vm0, %v337_v27, %v376_v30  ;;  %s2674_s11 = smov (!%p240_p0, %s1526_s11), 15 }
  0xee   : > { %v987_v20 = vsel %vm981_vm8, %v970_v8, %v732_v17  ;;  %v514_v57 = vsel %vm464_vm1, %v512_v40, %v513_v34  ;;  %v515_v17 = vrot.slane %v405_v44, 2  ;;  %v522_v55 = vrot.slane %v406_v9, 1 }
  0xef   : > { %887 = vrot.lane.b32.xlu1 %v504_v18, %s1806_s6  ;;  %745 = vrot.lane.b32.xlu0 %v502_v1, %s1803_s24  ;;  %v527_v39 = vrot.slane %v406_v9, 2 }
  0xf1   : > { %v826_v31 = vpop.permute.xlu1 %825  ;;  %v780_v32 = vpop.permute.xlu0 %779 }
  0xf2   : > { %v1020_v21 = vsel %vm1015_vm10, %v1003_v7, %v826_v31  ;;  %v1004_v22 = vsel %vm998_vm9, %v987_v20, %v780_v32  ;;  %v287_v31 = vrot.slane %v266_v15, 1  ;;  %v516_v32 = vsel %vm464_vm1, %v513_v34, %v515_v17 }
  0xf3   : > { %605 = vrot.lane.b32.xlu1 %v502_v1, %s1800_s13  ;;  %559 = vrot.lane.b32.xlu0 %v463_v2, %s1801_s14 }
  0xf5   : > { %v2312_v19 = vpop.permute.xlu1 %685  ;;  %v2314_v43 = vpop.permute.xlu0 %639 }
  0xf7   : > { %793 = vrot.lane.b32.xlu1 %v395_v61, %s1804_s8  ;;  %747 = vrot.lane.b32.xlu0 %v504_v18, %s1803_s24 }
  0xf9   : > { %v874_v47 = vpop.permute.xlu1 %873  ;;  %v828_v33 = vpop.permute.xlu0 %827 }
  0xfa   : > { %v1037_v50 = vsel %vm1032_vm11, %v1020_v21, %v874_v47  ;;  %v1021_v60 = vsel %vm1015_vm10, %v1004_v22, %v828_v33  ;;  %v525_v21 = vrot.slane %v338_v12, 2  ;;  %v937_v33 = vsel %vm930_vm5, %v920_v13, %v2285_v3 }
  0xfb   : > { %653 = vrot.lane.b32.xlu1 %v395_v61, %s1799_s12  ;;  %607 = vrot.lane.b32.xlu0 %v504_v18, %s1800_s13  ;;  %v396_v61 = vsel %vm308_vm0, %v287_v31, %v336_v26  ;;  %v954_v52 = vsel %vm947_vm6, %v937_v33, %v2294_v23  ;;  %s1527_s13 = sshll.u32 %s2674_s11, 1 }
  0xfc   : > { %1590 = vmatprep.mubr.msk.f32.mxu0 %vm1061_vm12, %v1037_v50  ;;  %v519_v42 = vrot.slane %v396_v61, 1  ;;  %v524_v47 = vrot.slane %v396_v61, 2  ;;  %v971_v5 = vsel %vm964_vm7, %v954_v52, %v2312_v19  ;;  %v528_v44 = vsel %vm464_vm1, %v525_v21, %v527_v39 }
  0xfd   : > { %v2336_v10 = vpop.permute.xlu1 %687  ;;  %v2338_v59 = vpop.permute.xlu0 %545  ;;  %v921_v19 = vsel %vm913_vm4, %v2021_v6, %v2287_v4 }
  0xfe   : > { %v526_v8 = vsel %vm464_vm1, %v524_v47, %v525_v21  ;;  %v938_v34 = vsel %vm930_vm5, %v921_v19, %v2296_v24 }
  0xff   : > { %841 = vrot.lane.b32.xlu1 %v509_v56, %s1805_s9  ;;  %795 = vrot.lane.b32.xlu0 %v335_v45, %s1804_s8  ;;  %v955_v48 = vsel %vm947_vm6, %v938_v34, %v2314_v43 }
 0x101   : > { %v876_v62 = vpop.permute.xlu1 %875  ;;  %v734_v63 = vpop.permute.xlu0 %733 }
 0x102   : > { %v1038_v0 = vsel %vm1032_vm11, %v1021_v60, %v876_v62  ;;  %v988_v58 = vsel %vm981_vm8, %v971_v5, %v734_v63  ;;  %v972_v63 = vsel %vm964_vm7, %v955_v48, %v2336_v10 }
 0x103   : > { %701 = vrot.lane.b32.xlu1 %v509_v56, %s1802_s23  ;;  %655 = vrot.lane.b32.xlu0 %v335_v45, %s1799_s12  ;;  %v520_v45 = vrot.slane %v338_v12, 1  ;;  %s239_s12 = scalar_select %p238_p13, %s1785_s19, 1 }
 0x104   : > { %1591 = vmatmul.mubr.msk.f32.gmra.mrb[4].mxu0 %vm1061_vm12, %v1038_v0 }
 0x105   : > { %v2354_v1 = vpop.permute.xlu1 %593  ;;  %v2356_v2 = vpop.permute.xlu0 %547  ;;  %v523_v49 = vsel %vm423_vm2, %v520_v45, %v522_v55  ;;  %v521_v50 = vsel %vm423_vm2, %v519_v42, %v520_v45  ;;  %s1528_s14 = sshll.u32 %s239_s12, 5 }
 0x107   : > { %889 = vrot.lane.b32.xlu1 %v514_v57, %s1806_s6  ;;  %843 = vrot.lane.b32.xlu0 %v511_v53, %s1805_s9 }
 0x109   : > { %v782_v18 = vpop.permute.xlu1 %781  ;;  %v736_v25 = vpop.permute.xlu0 %735 }
 0x10a   : > { %v1005_v3 = vsel %vm998_vm9, %v988_v58, %v782_v18  ;;  %v989_v0 = vsel %vm981_vm8, %v972_v63, %v736_v25  ;;  %v922_v25 = vsel %vm913_vm4, %v2055_v28, %v2338_v59  ;;  %v923_v28 = vsel %vm913_vm4, %v2058_v29, %v2356_v2 }
 0x10b   : > { %749 = vrot.lane.b32.xlu1 %v514_v57, %s1803_s24  ;;  %703 = vrot.lane.b32.xlu0 %v511_v53, %s1802_s23  ;;  %v939_v30 = vsel %vm930_vm5, %v922_v25, %v2354_v1  ;;  %s244_s23 = sadd.s32 %s1528_s14, %s1527_s13 }
 0x10d   : > { %v642_v36 = vpop.permute.xlu1 %641  ;;  %v2365_v38 = vpop.permute.xlu0 %595 }
 0x10e   : > { %v956_v31 = vsel %vm947_vm6, %v939_v30, %v642_v36  ;;  %v940_v59 = vsel %vm930_vm5, %v923_v28, %v2365_v38 }
 0x10f   : > { %751 = vrot.lane.b32.xlu1 %v516_v32, %s1803_s24  ;;  %891 = vrot.lane.b32.xlu0 %v516_v32, %s1806_s6  ;;  %s1529_s24 = sshll.u32 %s244_s23, 3 }
 0x110   : > { %s2505_s30 = scalar_lea.vmem %s2652_s3, %s1529_s24 }
 0x111   : > { %v830_v7 = vpop.permute.xlu1 %829  ;;  %v784_v46 = vpop.permute.xlu0 %783 }
 0x112   : > { %v1022_v20 = vsel %vm1015_vm10, %v1005_v3, %v830_v7  ;;  %v1006_v6 = vsel %vm998_vm9, %v989_v0, %v784_v46 }
 0x113   : > { %799 = vrot.lane.b32.xlu1 %v338_v12, %s1804_s8  ;;  %797 = vrot.lane.b32.xlu0 %v396_v61, %s1804_s8 }
 0x115   : > { %v690_v56 = vpop.permute.xlu1 %689  ;;  %v644_v11 = vpop.permute.xlu0 %643 }
 0x116   : > { %v973_v61 = vsel %vm964_vm7, %v956_v31, %v690_v56  ;;  %v957_v1 = vsel %vm947_vm6, %v940_v59, %v644_v11 }
 0x117   : > { %847 = vrot.lane.b32.xlu1 %v523_v49, %s1805_s9  ;;  %845 = vrot.lane.b32.xlu0 %v521_v50, %s1805_s9 }
 0x119   : > { %v878_v23 = vpop.permute.xlu1 %877  ;;  %v832_v22 = vpop.permute.xlu0 %831 }
 0x11a   : > { %v1039_v40 = vsel %vm1032_vm11, %v1022_v20, %v878_v23  ;;  %v1023_v4 = vsel %vm1015_vm10, %v1006_v6, %v832_v22 }
 0x11b   : > { %895 = vrot.lane.b32.xlu1 %v528_v44, %s1806_s6  ;;  %893 = vrot.lane.b32.xlu0 %v526_v8, %s1806_s6  ;;  %s227_s6 = scalar_lea.vmem [#allocation2], %s1980_s10 }
 0x11c   : > { %1593 = vmatprep.mubr.msk.f32.mxu0 %vm1061_vm12, %v1039_v40 }
 0x11d   : > { %v692_v60 = vpop.permute.xlu1 %691  ;;  %v550_v62 = vpop.permute.xlu0 %549 }
 0x11e   : > { %v974_v21 = vsel %vm964_vm7, %v957_v1, %v692_v60  ;;  %v924_v44 = vsel %vm913_vm4, %v2096_v51, %v550_v62 }
 0x121   : > { %v880_v57 = vpop.permute.xlu1 %879  ;;  %v738_v53 = vpop.permute.xlu0 %737 }
 0x122   : > { %v1040_v24 = vsel %vm1032_vm11, %v1023_v4, %v880_v57  ;;  %v990_v9 = vsel %vm981_vm8, %v973_v61, %v738_v53 }
 0x123   : > { %1594 = vmatmul.mubr.msk.f32.gmra.mrb[6].mxu0 %vm1061_vm12, %v1040_v24 }
 0x125   : > { %v598_v15 = vpop.permute.xlu1 %597  ;;  %v552_v16 = vpop.permute.xlu0 %551 }
 0x126   : > { %v941_v8 = vsel %vm930_vm5, %v924_v44, %v598_v15  ;;  %v925_v51 = vsel %vm913_vm4, %v2099_v54, %v552_v16 }
 0x129   : > { %v786_v43 = vpop.permute.xlu1 %785  ;;  %v740_v17 = vpop.permute.xlu0 %739 }
 0x12a   : > { %v1007_v45 = vsel %vm998_vm9, %v990_v9, %v786_v43  ;;  %v991_v47 = vsel %vm981_vm8, %v974_v21, %v740_v17 }
 0x12d   : > { %v646_v18 = vpop.permute.xlu1 %645  ;;  %v600_v26 = vpop.permute.xlu0 %599 }
 0x12e   : > { %v958_v20 = vsel %vm947_vm6, %v941_v8, %v646_v18  ;;  %v942_v62 = vsel %vm930_vm5, %v925_v51, %v600_v26 }
 0x131   : > { %v834_v27 = vpop.permute.xlu1 %833  ;;  %v788_v10 = vpop.permute.xlu0 %787 }
 0x132   : > { %v1024_v42 = vsel %vm1015_vm10, %v1007_v45, %v834_v27  ;;  %v1008_v33 = vsel %vm998_vm9, %v991_v47, %v788_v10 }
 0x135   : > { %v694_v32 = vpop.permute.xlu1 %693  ;;  %v648_v12 = vpop.permute.xlu0 %647 }
 0x136   : > { %v975_v40 = vsel %vm964_vm7, %v958_v20, %v694_v32  ;;  %v959_v6 = vsel %vm947_vm6, %v942_v62, %v648_v12 }
 0x139   : > { %v882_v55 = vpop.permute.xlu1 %881  ;;  %v836_v7 = vpop.permute.xlu0 %835 }
 0x13a   : > { %v1041_v46 = vsel %vm1032_vm11, %v1024_v42, %v882_v55  ;;  %v1025_v49 = vsel %vm1015_vm10, %v1008_v33, %v836_v7 }
 0x13b   : > { %1596 = vmatprep.mubr.msk.f32.mxu1 %vm1061_vm12, %v1041_v46 }
 0x13d   : > { %v696_v36 = vpop.permute.xlu1 %695  ;;  %v554_v13 = vpop.permute.xlu0 %553 }
 0x13e   : > { %v976_v53 = vsel %vm964_vm7, %v959_v6, %v696_v36  ;;  %v926_v12 = vsel %vm913_vm4, %v2150_v14, %v554_v13  ;;  %v2500_v6 = vld [vmem:[%s2651_s2] ss:$0 sm:$0xff] }
 0x141   : > { %v884_v50 = vpop.permute.xlu1 %883  ;;  %v742_v39 = vpop.permute.xlu0 %741 }
 0x142   : > { %v1042_v29 = vsel %vm1032_vm11, %v1025_v49, %v884_v50  ;;  %v992_v19 = vsel %vm981_vm8, %v975_v40, %v742_v39 }
 0x143   : > { %1597 = vmatmul.mubr.msk.f32.vlgmr.msra.gmra.mrb[0].mxu1 %vm1061_vm12, %v1042_v29 }
 0x145   : > { %v602_v2 = vpop.permute.xlu1 %601  ;;  %v556_v38 = vpop.permute.xlu0 %555 }
 0x146   : > { %v943_v61 = vsel %vm930_vm5, %v926_v12, %v602_v2  ;;  %v927_v14 = vsel %vm913_vm4, %v2159_v35, %v556_v38 }
 0x149   : > { %v790_v52 = vpop.permute.xlu1 %789  ;;  %v744_v56 = vpop.permute.xlu0 %743 }
 0x14a   : > { %v1009_v34 = vsel %vm998_vm9, %v992_v19, %v790_v52  ;;  %v993_v24 = vsel %vm981_vm8, %v976_v53, %v744_v56 }
 0x14d   : > { %v650_v11 = vpop.permute.xlu1 %649  ;;  %v604_v5 = vpop.permute.xlu0 %603 }
 0x14e   : > { %v960_v9 = vsel %vm947_vm6, %v943_v61, %v650_v11  ;;  %v944_v13 = vsel %vm930_vm5, %v927_v14, %v604_v5 }
 0x151   : > { %v838_v58 = vpop.permute.xlu1 %837  ;;  %v792_v3 = vpop.permute.xlu0 %791 }
 0x152   : > { %v1026_v48 = vsel %vm1015_vm10, %v1009_v34, %v838_v58  ;;  %v1010_v15 = vsel %vm998_vm9, %v993_v24, %v792_v3 }
 0x155   : > { %v698_v23 = vpop.permute.xlu1 %697  ;;  %v652_v22 = vpop.permute.xlu0 %651 }
 0x156   : > { %v977_v55 = vsel %vm964_vm7, %v960_v9, %v698_v23  ;;  %v961_v21 = vsel %vm947_vm6, %v944_v13, %v652_v22 }
 0x159   : > { %v886_v60 = vpop.permute.xlu1 %885  ;;  %v840_v63 = vpop.permute.xlu0 %839 }
 0x15a   : > { %v1043_v0 = vsel %vm1032_vm11, %v1026_v48, %v886_v60  ;;  %v1027_v43 = vsel %vm1015_vm10, %v1010_v15, %v840_v63 }
 0x15b   : > { %1599 = vmatprep.mubr.msk.f32.mxu1 %vm1061_vm12, %v1043_v0 }
 0x15d   : > { %v700_v4 = vpop.permute.xlu1 %699  ;;  %v558_v57 = vpop.permute.xlu0 %557 }
 0x15e   : > { %v978_v49 = vsel %vm964_vm7, %v961_v21, %v700_v4  ;;  %v928_v11 = vsel %vm913_vm4, %v2229_v37, %v558_v57 }
 0x161   : > { %v888_v17 = vpop.permute.xlu1 %887  ;;  %v746_v18 = vpop.permute.xlu0 %745 }
 0x162   : > { %v1044_v54 = vsel %vm1032_vm11, %v1027_v43, %v888_v17  ;;  %v994_v7 = vsel %vm981_vm8, %v977_v55, %v746_v18 }
 0x163   : > { %1600 = vmatmul.mubr.msk.f32.gmra.mrb[2].mxu1 %vm1061_vm12, %v1044_v54 }
 0x165   : > { %v606_v16 = vpop.permute.xlu1 %605  ;;  %v560_v26 = vpop.permute.xlu0 %559 }
 0x166   : > { %v929_v5 = vsel %vm913_vm4, %v2238_v41, %v560_v26  ;;  %v945_v58 = vsel %vm930_vm5, %v928_v11, %v606_v16 }
 0x169   : > { %v794_v27 = vpop.permute.xlu1 %793  ;;  %v748_v10 = vpop.permute.xlu0 %747 }
 0x16a   : > { %v1011_v46 = vsel %vm998_vm9, %v994_v7, %v794_v27  ;;  %v995_v50 = vsel %vm981_vm8, %v978_v49, %v748_v10 }
 0x16d   : > { %v654_v25 = vpop.permute.xlu1 %653  ;;  %v608_v30 = vpop.permute.xlu0 %607 }
 0x16e   : > { %v946_v3 = vsel %vm930_vm5, %v929_v5, %v608_v30  ;;  %v962_v44 = vsel %vm947_vm6, %v945_v58, %v654_v25 }
 0x171   : > { %v842_v31 = vpop.permute.xlu1 %841  ;;  %v796_v32 = vpop.permute.xlu0 %795 }
 0x172   : > { %v1028_v28 = vsel %vm1015_vm10, %v1011_v46, %v842_v31  ;;  %v1012_v39 = vsel %vm998_vm9, %v995_v50, %v796_v32 }
 0x175   : > { %v702_v45 = vpop.permute.xlu1 %701  ;;  %v656_v42 = vpop.permute.xlu0 %655 }
 0x176   : > { %v963_v8 = vsel %vm947_vm6, %v946_v3, %v656_v42  ;;  %v979_v22 = vsel %vm964_vm7, %v962_v44, %v702_v45 }
 0x179   : > { %v890_v59 = vpop.permute.xlu1 %889  ;;  %v844_v1 = vpop.permute.xlu0 %843 }
 0x17a   : > { %v1045_v36 = vsel %vm1032_vm11, %v1028_v28, %v890_v59  ;;  %v1029_v29 = vsel %vm1015_vm10, %v1012_v39, %v844_v1 }
 0x17b   : > { %1602 = vmatprep.mubr.msk.f32.mxu1 %vm1061_vm12, %v1045_v36 }
 0x17d   : > { %v750_v47 = vpop.permute.xlu1 %749  ;;  %v704_v33 = vpop.permute.xlu0 %703 }
 0x17e   : > { %v980_v40 = vsel %vm964_vm7, %v963_v8, %v704_v33  ;;  %v996_v37 = vsel %vm981_vm8, %v979_v22, %v750_v47 }
 0x181   : > { %v752_v2 = vpop.permute.xlu1 %751  ;;  %v892_v52 = vpop.permute.xlu0 %891 }
 0x182   : > { %v1046_v35 = vsel %vm1032_vm11, %v1029_v29, %v892_v52  ;;  %v997_v41 = vsel %vm981_vm8, %v980_v40, %v752_v2 }
 0x183   : > { %1603 = vmatmul.mubr.msk.f32.gmra.mrb[4].mxu1 %vm1061_vm12, %v1046_v35 }
 0x185   : > { %v800_v38 = vpop.permute.xlu1 %799  ;;  %v798_v56 = vpop.permute.xlu0 %797 }
 0x186   : > { %v1014_v19 = vsel %vm998_vm9, %v997_v41, %v800_v38  ;;  %v1013_v34 = vsel %vm998_vm9, %v996_v37, %v798_v56 }
 0x189   : > { %v848_v20 = vpop.permute.xlu1 %847  ;;  %v846_v23 = vpop.permute.xlu0 %845 }
 0x18a   : > { %v1031_v48 = vsel %vm1015_vm10, %v1014_v19, %v848_v20  ;;  %v1030_v60 = vsel %vm1015_vm10, %v1013_v34, %v846_v23 }
 0x18d   : > { %v896_v63 = vpop.permute.xlu1 %895  ;;  %v894_v0 = vpop.permute.xlu0 %893 }
 0x18e   : > { %v1048_v51 = vsel %vm1032_vm11, %v1031_v48, %v896_v63  ;;  %v1047_v62 = vsel %vm1032_vm11, %v1030_v60, %v894_v0 }
 0x18f   : > { %1605 = vmatprep.mubr.msk.f32.mxu1 %vm1061_vm12, %v1047_v62 }
 0x190   : > { %1606 = vmatmul.mubr.msk.f32.gmra.mrb[6].mxu1 %vm1061_vm12, %v1048_v51 }
 0x197   : > { %v1586_v4 = vpop.f32.mrb[0].mxu0 }
 0x198   : > { %v1186_v57 = vadd.f32 %v1586_v4, %v2500_v6  ;;  %v1180_v53 = vpop.f32.mrb[1].mxu0 }
 0x199   : > { %v1181_v24 = vadd.f32 %v2500_v6, %v1180_v53 }
 0x19a   : > { %1260 = vst.msk [vmem:[%s2505_s30 + $0x8] sm:$0xff] %vm913_vm4, %v1186_v57  ;;  %v1276_v15 = vsel %vm913_vm4, %v1186_v57, 0.0  ;;  %v1313_v43 = vmul.f32 %v1186_v57, %v1186_v57 }
 0x19b   : > { %1259 = vst.msk [vmem:[%s2505_s30] sm:$0xff] %vm913_vm4, %v1181_v24  ;;  %v1275_v17 = vsel %vm913_vm4, %v1181_v24, 0.0  ;;  %v1312_v18 = vmul.f32 %v1181_v24, %v1181_v24 }
 0x19c   : > { %v1329_v54 = vsel %vm913_vm4, %v1313_v43, 0.0  ;;  %v1277_v16 = vadd.f32 %v1276_v15, %v1275_v17 }
 0x19d   : > { %v1328_v26 = vsel %vm913_vm4, %v1312_v18, 0.0 }
 0x19e   : > { %v1330_v27 = vadd.f32 %v1329_v54, %v1328_v26 }
 0x1b7   : > { %v1589_v10 = vpop.f32.mrb[2].mxu0 }
 0x1b8   : > { %v1196_v25 = vadd.f32 %v1589_v10, %v2500_v6  ;;  %v1190_v30 = vpop.f32.mrb[3].mxu0 }
 0x1b9   : > { %v1191_v31 = vadd.f32 %v2500_v6, %v1190_v30 }
 0x1ba   : > { %1262 = vst.msk [vmem:[%s2505_s30 + $0x18] sm:$0xff] %vm913_vm4, %v1196_v25  ;;  %v1315_v32 = vmul.f32 %v1196_v25, %v1196_v25  ;;  %v1280_v45 = vsel %vm913_vm4, %v1196_v25, 0.0 }
 0x1bb   : > { %1261 = vst.msk [vmem:[%s2505_s30 + $0x10] sm:$0xff] %vm913_vm4, %v1191_v31  ;;  %v1278_v12 = vsel %vm913_vm4, %v1191_v31, 0.0  ;;  %v1314_v61 = vmul.f32 %v1191_v31, %v1191_v31 }
 0x1bc   : > { %v1279_v9 = vadd.f32 %v1278_v12, %v1277_v16  ;;  %v1333_v46 = vsel %vm913_vm4, %v1315_v32, 0.0 }
 0x1bd   : > { %v1331_v42 = vsel %vm913_vm4, %v1314_v61, 0.0 }
 0x1be   : > { %v1332_v55 = vadd.f32 %v1331_v42, %v1330_v27  ;;  %v1281_v7 = vadd.f32 %v1280_v45, %v1279_v9 }
 0x1c0   : > { %v1334_v28 = vadd.f32 %v1333_v46, %v1332_v55 }
 0x1d7   : > { %v1592_v59 = vpop.f32.mrb[4].mxu0 }
 0x1d8   : > { %v1206_v1 = vadd.f32 %v1592_v59, %v2500_v6  ;;  %v1200_v36 = vpop.f32.mrb[5].mxu0 }
 0x1d9   : > { %v1201_v14 = vadd.f32 %v2500_v6, %v1200_v36 }
 0x1da   : > { %1264 = vst.msk [vmem:[%s2505_s30 + $0x28] sm:$0xff] %vm913_vm4, %v1206_v1  ;;  %v1317_v13 = vmul.f32 %v1206_v1, %v1206_v1  ;;  %v1284_v49 = vsel %vm913_vm4, %v1206_v1, 0.0 }
 0x1db   : > { %1263 = vst.msk [vmem:[%s2505_s30 + $0x20] sm:$0xff] %vm913_vm4, %v1201_v14  ;;  %v1282_v21 = vsel %vm913_vm4, %v1201_v14, 0.0  ;;  %v1316_v47 = vmul.f32 %v1201_v14, %v1201_v14 }
 0x1dc   : > { %v1283_v33 = vadd.f32 %v1282_v21, %v1281_v7  ;;  %v1337_v2 = vsel %vm913_vm4, %v1317_v13, 0.0 }
 0x1dd   : > { %v1335_v50 = vsel %vm913_vm4, %v1316_v47, 0.0 }
 0x1de   : > { %v1336_v39 = vadd.f32 %v1335_v50, %v1334_v28  ;;  %v1285_v29 = vadd.f32 %v1284_v49, %v1283_v33 }
 0x1e0   : > { %v1338_v52 = vadd.f32 %v1337_v2, %v1336_v39 }
 0x1f6   : > { %v1595_v35 = vpop.f32.mrb[6].mxu0 }
 0x1f7   : > { %v1216_v38 = vadd.f32 %v1595_v35, %v2500_v6  ;;  %v1210_v56 = vpop.f32.mrb[7].mxu0 }
 0x1f8   : > { %v1211_v11 = vadd.f32 %v2500_v6, %v1210_v56 }
 0x1f9   : > { %1266 = vst.msk [vmem:[%s2505_s30 + $0x38] sm:$0xff] %vm913_vm4, %v1216_v38  ;;  %v1319_v5 = vmul.f32 %v1216_v38, %v1216_v38  ;;  %v1288_v8 = vsel %vm913_vm4, %v1216_v38, 0.0 }
 0x1fa   : > { %1265 = vst.msk [vmem:[%s2505_s30 + $0x30] sm:$0xff] %vm913_vm4, %v1211_v11  ;;  %v1286_v58 = vsel %vm913_vm4, %v1211_v11, 0.0  ;;  %v1318_v3 = vmul.f32 %v1211_v11, %v1211_v11 }
 0x1fb   : > { %v1287_v44 = vadd.f32 %v1286_v58, %v1285_v29  ;;  %v1341_v40 = vsel %vm913_vm4, %v1319_v5, 0.0 }
 0x1fc   : > { %v1339_v20 = vsel %vm913_vm4, %v1318_v3, 0.0 }
 0x1fd   : > { %v1340_v23 = vadd.f32 %v1339_v20, %v1338_v52  ;;  %v1289_v22 = vadd.f32 %v1288_v8, %v1287_v44 }
 0x1ff   : > { %v1342_v37 = vadd.f32 %v1341_v40, %v1340_v23 }
 0x216   : > { %v1598_v41 = vpop.f32.mrb[0].mxu1 }
 0x217   : > { %v1226_v19 = vadd.f32 %v1598_v41, %v2500_v6  ;;  %v1220_v34 = vpop.f32.mrb[1].mxu1 }
 0x218   : > { %v1221_v48 = vadd.f32 %v2500_v6, %v1220_v34 }
 0x219   : > { %1268 = vst.msk [vmem:[%s2505_s30 + $0x48] sm:$0xff] %vm913_vm4, %v1226_v19  ;;  %v1321_v60 = vmul.f32 %v1226_v19, %v1226_v19  ;;  %v1292_v62 = vsel %vm913_vm4, %v1226_v19, 0.0 }
 0x21a   : > { %1267 = vst.msk [vmem:[%s2505_s30 + $0x40] sm:$0xff] %vm913_vm4, %v1221_v48  ;;  %v1290_v63 = vsel %vm913_vm4, %v1221_v48, 0.0  ;;  %v1320_v0 = vmul.f32 %v1221_v48, %v1221_v48 }
 0x21b   : > { %v1291_v51 = vadd.f32 %v1290_v63, %v1289_v22  ;;  %v1345_v24 = vsel %vm913_vm4, %v1321_v60, 0.0  ;;  %v1807_v63 = vmov (!%p1548_p1), 0.0  }
 0x21c   : > { %v1343_v4 = vsel %vm913_vm4, %v1320_v0, 0.0  ;;  %1371 = vst.msk [vmem:[%s227_s6] sm:$0x3] (!%p1548_p1), %vm1370_vm13, %v1807_v63 }
 0x21d   : > { %v1344_v57 = vadd.f32 %v1343_v4, %v1342_v37  ;;  %v1293_v53 = vadd.f32 %v1292_v62, %v1291_v51 }
 0x21f   : > { %v1346_v15 = vadd.f32 %v1345_v24, %v1344_v57 }
 0x236   : > { %v1601_v43 = vpop.f32.mrb[2].mxu1 }
 0x237   : > { %v1236_v17 = vadd.f32 %v1601_v43, %v2500_v6  ;;  %v1230_v18 = vpop.f32.mrb[3].mxu1 }
 0x238   : > { %v1231_v54 = vadd.f32 %v2500_v6, %v1230_v18 }
 0x239   : > { %1270 = vst.msk [vmem:[%s2505_s30 + $0x58] sm:$0xff] %vm913_vm4, %v1236_v17  ;;  %v1323_v16 = vmul.f32 %v1236_v17, %v1236_v17  ;;  %v1296_v25 = vsel %vm913_vm4, %v1236_v17, 0.0 }
 0x23a   : > { %1269 = vst.msk [vmem:[%s2505_s30 + $0x50] sm:$0xff] %vm913_vm4, %v1231_v54  ;;  %v1294_v26 = vsel %vm913_vm4, %v1231_v54, 0.0  ;;  %v1322_v27 = vmul.f32 %v1231_v54, %v1231_v54 }
 0x23b   : > { %v1295_v10 = vadd.f32 %v1294_v26, %v1293_v53  ;;  %v1349_v12 = vsel %vm913_vm4, %v1323_v16, 0.0 }
 0x23c   : > { %v1347_v30 = vsel %vm913_vm4, %v1322_v27, 0.0 }
 0x23d   : > { %v1348_v31 = vadd.f32 %v1347_v30, %v1346_v15  ;;  %v1297_v32 = vadd.f32 %v1296_v25, %v1295_v10 }
 0x23f   : > { %v1350_v61 = vadd.f32 %v1349_v12, %v1348_v31 }
 0x256   : > { %v1604_v9 = vpop.f32.mrb[4].mxu1 }
 0x257   : > { %v1246_v45 = vadd.f32 %v1604_v9, %v2500_v6  ;;  %v1240_v42 = vpop.f32.mrb[5].mxu1 }
 0x258   : > { %v1241_v55 = vadd.f32 %v2500_v6, %v1240_v42 }
 0x259   : > { %1272 = vst.msk [vmem:[%s2505_s30 + $0x68] sm:$0xff] %vm913_vm4, %v1246_v45  ;;  %v1325_v7 = vmul.f32 %v1246_v45, %v1246_v45  ;;  %v1300_v1 = vsel %vm913_vm4, %v1246_v45, 0.0 }
 0x25a   : > { %1271 = vst.msk [vmem:[%s2505_s30 + $0x60] sm:$0xff] %vm913_vm4, %v1241_v55  ;;  %v1298_v46 = vsel %vm913_vm4, %v1241_v55, 0.0  ;;  %v1324_v28 = vmul.f32 %v1241_v55, %v1241_v55 }
 0x25b   : > { %v1299_v59 = vadd.f32 %v1298_v46, %v1297_v32  ;;  %v1353_v21 = vsel %vm913_vm4, %v1325_v7, 0.0 }
 0x25c   : > { %v1351_v36 = vsel %vm913_vm4, %v1324_v28, 0.0 }
 0x25d   : > { %v1352_v14 = vadd.f32 %v1351_v36, %v1350_v61  ;;  %v1301_v13 = vadd.f32 %v1300_v1, %v1299_v59 }
 0x25f   : > { %v1354_v47 = vadd.f32 %v1353_v21, %v1352_v14 }
 0x263   : > { %v1607_v33 = vpop.f32.mrb[6].mxu1 }
 0x264   : > { %v1256_v49 = vadd.f32 %v1607_v33, %v2500_v6  ;;  %v1250_v50 = vpop.f32.mrb[7].mxu1 }
 0x265   : > { %v1251_v39 = vadd.f32 %v2500_v6, %v1250_v50 }
 0x266   : > { %1274 = vst.msk [vmem:[%s2505_s30 + $0x78] sm:$0xff] %vm913_vm4, %v1256_v49  ;;  %v1327_v29 = vmul.f32 %v1256_v49, %v1256_v49  ;;  %v1304_v38 = vsel %vm913_vm4, %v1256_v49, 0.0 }
 0x267   : > { %1273 = vst.msk [vmem:[%s2505_s30 + $0x70] sm:$0xff] %vm913_vm4, %v1251_v39  ;;  %v1302_v2 = vsel %vm913_vm4, %v1251_v39, 0.0  ;;  %v1326_v52 = vmul.f32 %v1251_v39, %v1251_v39 }
 0x268   : > { %v1303_v35 = vadd.f32 %v1302_v2, %v1301_v13  ;;  %v1357_v58 = vsel %vm913_vm4, %v1327_v29, 0.0 }
 0x269   : > { %v1355_v56 = vsel %vm913_vm4, %v1326_v52, 0.0 }
 0x26a   : > { %v1305_v11 = vadd.f32 %v1304_v38, %v1303_v35  ;;  %v1356_v5 = vadd.f32 %v1355_v56, %v1354_v47 }
 0x26c   : > { %v1306_v3 = vrot.slane %v1305_v11, 4  ;;  %v1358_v6 = vadd.f32 %v1357_v58, %v1356_v5 }
 0x26e   : > { %v1307_v44 = vadd.f32 %v1306_v3, %v1305_v11  ;;  %v1359_v8 = vrot.slane %v1358_v6, 4 }
 0x270   : > { %v1308_v20 = vrot.slane %v1307_v44, 2  ;;  %v1360_v23 = vadd.f32 %v1359_v8, %v1358_v6 }
 0x272   : > { %v1309_v22 = vadd.f32 %v1308_v20, %v1307_v44  ;;  %v1361_v40 = vrot.slane %v1360_v23, 2 }
 0x274   : > { %v1310_v37 = vrot.slane %v1309_v22, 1  ;;  %v1362_v41 = vadd.f32 %v1361_v40, %v1360_v23  ;;  %1369 = sbr.rel (%p1548_p1) target bundleno = 635 (0x27b), region = 36 }
 0x276   : > { %v1363_v19 = vrot.slane %v1362_v41, 1  ;;  %v1311_v34 = vadd.f32 %v1310_v37, %v1309_v22 }
 0x278   : > { %v1364_v48 = vadd.f32 %v1363_v19, %v1362_v41 }
 0x27a   : > { %v1365_v60 = vsel %vm308_vm0, %v1311_v34, %v1364_v48 }
 0x27b PF: > { %v1372_v0 = vld [vmem:[%s227_s6] sm:$0x3]  ;;  %vm1374_vm14 = vcmask 25600   ;;  %s1550_s11 = sshll.u32 %s1785_s19, 5  ;;  %s1404_s10 = sshll.u32 %s227_s6, 4  ;;  %s2596_s10 = int_to_ptr.vmem [resolvable:$true] %s1404_s10 }
 0x27c   : > { %v1373_v51 = vadd.f32 %v1372_v0, %v1365_v60  ;;  %s2594_s14 = scalar_lea.hbm %s2653_s4, %s1550_s11  ;;  %s2657_s18 = sand.u32 1, %s1773_s16  }
 0x27d   : > { %s1387_s23 = scalar_lea.sflag [#allocation3], %s2657_s18  ;;  %s1703_s24 = scalar_lea.vmem %s2596_s10, 32 }
 0x27e   : > { %1375 = vst.msk [vmem:[%s227_s6] sm:$0x3] %vm1374_vm14, %v1373_v51  ;;  %p1704_p2 = scmp.ne.s32.totalorder %s2596_s10, %s1703_s24  ;;  %s1808_s19 = smov [#allocation2]  }
 0x27f   : > { %s1707_s8 = sshll.u32 %s1808_s19, 4  ;;  %s1708_s8 = int_to_ptr.vmem [resolvable:$false] %s1707_s8 }
 0x280   : > { %p1705_p4 = pnand %p1704_p2, %p1883_p3  ;;  %s1709_s9 = scalar_lea.vmem %s1708_s8, 64 }
 0x281   : > { %p1710_p6 = scmp.lt.s32.totalorder %s2596_s10, %s1708_s8  ;;  %p1711_p7 = scmp.lt.s32.totalorder %s1709_s9, %s1703_s24 }
 0x282   : > { %p1706_p5 = pneg %p1705_p4 }
 0x283   : > { %p1712_p8 = por %p1711_p7, %p1710_p6 }
 0x285   : > { %p1713_p10 = pnand %p1712_p8, %p1706_p5 }
 0x287   : > { %1716 = shalt.err (!%p1713_p10)
}
 0x288   : > { %s1717_s7 = scalar_lea.hbm %s2594_s14, 32  ;;  %s1721_s6 = scalar_lea.hbm %s2653_s4, 64 }
 0x289   : > { %p1718_p11 = scmp.ne.s32.totalorder %s2594_s14, %s1717_s7  ;;  %p1722_p0 = scmp.lt.u32.totalorder %s2594_s14, %s2653_s4 }
 0x28a   : > { %p1723_p1 = scmp.lt.u32.totalorder %s1721_s6, %s1717_s7  ;;  %p1725_p4 = scmp.lt.u32.totalorder %s1717_s7, %s2594_s14 }
 0x28b   : > { %p1719_p12 = pnand %p1718_p11, %p1883_p3 }
 0x28c   : > { %p1724_p2 = por %p1723_p1, %p1722_p0 }
 0x28d   : > { %p1720_p13 = pneg %p1719_p12 }
 0x28e   : > { %p1726_p5 = por %p1725_p4, %p1724_p2 }
 0x290   : > { %p1727_p6 = pnand %p1726_p5, %p1720_p13 }
 0x292   : > { %1730 = shalt.err (!%p1727_p6)
}
 0x293   : > { %1623 = dma.vmem_to_hbm [thread:$0]  (%p1883_p3), %s2596_s10, 32, %s2594_s14, %s1387_s23  }
 0x294 PF: > { %p1629_p7 = scmp.ge.s32.totalorder %s1797_s22, 2  ;;  %s1429_s13 = sand.u32 1, %s1769_s15  }
 0x295   : > { %s1430_s18 = scalar_lea.sflag [#allocation3], %s1429_s13 }
 0x296   : > { %p1626_p8 = pnand %p1629_p7, %p1893_p9 }
 0x298   : > { %1764 = dma.done.wait (!%p1626_p8), %s1430_s18, 32  }
 0x299   : > { %1766 = vsyncadd (!%p1626_p8), %s1430_s18, 4294967264  ;;  %s18_s22 = sadd.s32 1, %s1797_s22   ;;  %s2658_s15 = smov %s1773_s16 }
 0x29a   : > { %p15_p10 = scmp.ge.s32.totalorder %s18_s22, 6   ;;  %s2659_s16 = smov %s1777_s17 }
 0x29b   : > { %s2660_s17 = smov %s1901_s5  ;;  %s2661_s18 = smov %s1789_s20 }
 0x29c   : > { %s2662_s19 = smov %s1793_s21  ;;  %s2663_s20 = smov %s2666_s25 }
 0x29d   : > { %s2664_s21 = smov %s2670_s26  ;;  %17 = sbr.rel (!%p15_p10) target bundleno = 5 (0x5), region = 83 }
 0x2a4   :  { %1435 = vsyncpa [#allocation3], 1 }
 0x2a5   :  { %1437 = vsyncpa [#allocation3 + $0x1], 1 }

</bundles_post_ra>
